<compile_context>
chip_gen: v6e
topology: v6e:2x2x1
jax: 0.10.0
libtpu: 0.0.40
codegen_flags: <defaults>
</compile_context>

<pallas_src>
import functools

import jax
import jax.numpy as jnp
from jax.experimental import pallas as pl
from jax.experimental.pallas import tpu as pltpu


def _resnet_block_kernel(x_ref, w1_ref, w2_ref, o_ref, *, H, W, C, eps, imgs_per_step):
    # x_ref : (Nb, C, H*W)    images for this grid step, pixels on lanes (lane-dense)
    # w*_ref: (C, 9*C)        bf16 weights, columns ordered tap-major / C_in-minor
    # o_ref : (Nb, C, H*W)
    P = H * W

    # ---- per-pixel boundary masks for the shifted taps (computed once, shared by both
    #      convs and all images in the block; no vector integer division needed).
    pix = jax.lax.broadcasted_iota(jnp.int32, (1, P), 1)
    if W & (W - 1) == 0:                       # power-of-two width: bitwise ops only
        y_pos = pix >> (W.bit_length() - 1)
        x_pos = pix & (W - 1)
    else:                                      # general width: float trick, no int div
        y_pos = jnp.floor((pix.astype(jnp.float32) + 0.5) * (1.0 / W)).astype(jnp.int32)
        x_pos = pix - y_pos * W
    can_left, can_right = x_pos > 0, x_pos < W - 1     # kx = -1 / +1 reads a valid pixel
    can_up, can_down = y_pos > 0, y_pos < H - 1        # ky = -1 / +1 reads a valid pixel

    def tap_mask(ky, kx):
        terms = []
        if ky == -1:
            terms.append(can_up)
        elif ky == 1:
            terms.append(can_down)
        if kx == -1:
            terms.append(can_left)
        elif kx == 1:
            terms.append(can_right)
        if not terms:
            return None
        m = terms[0]
        for extra in terms[1:]:
            m = jnp.logical_and(m, extra)
        return m

    def conv3x3(act, w_ref):
        # act: (C, P) f32.  Build the (9C, P) im2col with XLU lane rolls + masks, then
        # contract the 9 taps and C_in jointly in a single MXU matmul (K = 9C).
        taps = []
        for ky in (-1, 0, 1):
            for kx in (-1, 0, 1):
                s = ky * W + kx                # this tap reads pixel p + s
                t = act if s == 0 else pltpu.roll(act, shift=(-s) % P, axis=1)
                m = tap_mask(ky, kx)
                if m is not None:
                    t = jnp.where(m, t, 0.0)   # zero the conv's implicit padding
                taps.append(t.astype(jnp.bfloat16))
        col = jnp.concatenate(taps, axis=0)    # (9C, P), sublane-aligned concat
        # bf16 x bf16 -> f32 accumulate: single-pass MXU on v5e/v6e/v7x.
        return jnp.dot(w_ref[...], col, preferred_element_type=jnp.float32)   # (C, P)

    def instance_norm(y):                      # per-channel stats over the P pixels
        mean = jnp.mean(y, axis=1, keepdims=True)          # (C, 1)
        d = y - mean
        var = jnp.mean(d * d, axis=1, keepdims=True)       # biased, like PyTorch
        return d * jax.lax.rsqrt(var + eps)

    for b in range(imgs_per_step):             # static unroll over images in this block
        a0 = x_ref[b].astype(jnp.float32)      # (C, P)
        h = jnp.maximum(instance_norm(conv3x3(a0, w1_ref)), 0.0)
        y = instance_norm(conv3x3(h, w2_ref))
        o_ref[b] = (a0 + y).astype(o_ref.dtype)


def _images_per_step(n):
    # Batch images per grid step to amortize per-step pipeline overhead, but keep at
    # least two grid steps so the "parallel" batch axis can be split across v7x's cores.
    best = 1
    for d in range(1, n + 1):
        if n % d == 0 and d <= 8 and n // d >= 2:
            best = d
    return best


def resnet_block(x, w1, b1, w2, b2, *, eps=1e-5):
    """x: (N, C, H, W).  w1, w2: (C, C, 3, 3) PyTorch OIHW.  b1, b2: (C,) (see note)."""
    # InstanceNorm2d(affine=False) subtracts the per-channel mean, which cancels the conv
    # bias exactly, so the biases are not passed to the kernel (perf feedback item).
    del b1, b2
    N, C, H, W = x.shape
    P = H * W
    nb = _images_per_step(N)

    # (N, C, H, W) -> (N, C, H*W): contiguous reshape; kernel I/O blocks are lane-dense.
    x_flat = x.reshape(N, C, P)

    # OIHW -> (C_out, 9*C_in), columns tap-major (t = (ky+1)*3 + (kx+1)) / C_in-minor to
    # match the kernel's im2col ordering; bf16 halves resident weight VMEM.
    def pack_w(w):
        return (jnp.transpose(w.reshape(C, C, 9), (0, 2, 1))
                .reshape(C, 9 * C).astype(jnp.bfloat16))

    w1_t, w2_t = pack_w(w1), pack_w(w2)

    kernel = functools.partial(_resnet_block_kernel, H=H, W=W, C=C, eps=eps,
                               imgs_per_step=nb)

    out_flat = pl.pallas_call(
        kernel,
        out_shape=jax.ShapeDtypeStruct((N, C, P), x.dtype),
        grid_spec=pltpu.PrefetchScalarGridSpec(
            num_scalar_prefetch=0,
            grid=(N // nb,),
            in_specs=[
                pl.BlockSpec((nb, C, P), lambda n: (n, 0, 0)),   # images (lane-dense)
                pl.BlockSpec((C, 9 * C), lambda n: (0, 0)),      # conv1 weights (resident)
                pl.BlockSpec((C, 9 * C), lambda n: (0, 0)),      # conv2 weights (resident)
            ],
            out_specs=pl.BlockSpec((nb, C, P), lambda n: (n, 0, 0)),
        ),
        compiler_params=pltpu.CompilerParams(
            dimension_semantics=("parallel",)),                  # batch axis -> megacore
    )(x_flat, w1_t, w2_t)

    return out_flat.reshape(N, C, H, W)


def _reference(x, w1, b1, w2, b2, eps=1e-5):
    # pure-JAX / XLA f32 reference matching the PyTorch module
    def conv(z, w, b):
        y = jax.lax.conv_general_dilated(
            z, w, window_strides=(1, 1), padding=((1, 1), (1, 1)),
            dimension_numbers=('NCHW', 'OIHW', 'NCHW'),
            precision=jax.lax.Precision.HIGHEST)
        return y + b[None, :, None, None]

    def inorm(y):
        mean = jnp.mean(y, axis=(2, 3), keepdims=True)
        var = jnp.var(y, axis=(2, 3), keepdims=True)
        return (y - mean) * jax.lax.rsqrt(var + eps)

    h = jnp.maximum(inorm(conv(x, w1, b1)), 0.0)
    return x + inorm(conv(h, w2, b2))


if __name__ == "__main__":
    # Small shapes consistent with ResnetBlock(dim=32): batch=2, dim=32, 16x16 spatial.
    N, C, H, W = 2, 32, 16, 16

    key = jax.random.PRNGKey(0)
    kx_, kw1, kb1, kw2, kb2 = jax.random.split(key, 5)

    x = jax.random.normal(kx_, (N, C, H, W), dtype=jnp.float32)
    # Conv2d(dim, dim, kernel_size=3, padding=1, bias=True) weights, OIHW
    w1 = jax.random.normal(kw1, (C, C, 3, 3), dtype=jnp.float32) * 0.05
    b1 = jax.random.normal(kb1, (C,), dtype=jnp.float32) * 0.05
    w2 = jax.random.normal(kw2, (C, C, 3, 3), dtype=jnp.float32) * 0.05
    b2 = jax.random.normal(kb2, (C,), dtype=jnp.float32) * 0.05

    out = resnet_block(x, w1, b1, w2, b2)
    jax.block_until_ready(out)

    ref = _reference(x, w1, b1, w2, b2)
    assert out.shape == x.shape
    max_err = float(jnp.max(jnp.abs(out - ref)))
    # The kernel feeds bf16 operands to the MXU (f32 accumulate) per the perf guidance;
    # two chained conv + instance-norm stages give a worst-case ~1-2e-2 absolute deviation
    # from the f32 reference, while any structural bug (wrong shift/mask) produces >= 0.1.
    assert max_err < 3e-2, f"mismatch vs f32 reference: max abs err = {max_err}"

    print("KERNEL_OK")
</pallas_src>

<mosaic_0001>
module attributes {stable_mosaic.version = 11 : i64} {
  func.func @_resnet_block_kernel(%arg0: i32, %arg1: memref<1x32x256xf32, #tpu.memory_space<vmem>>, %arg2: memref<32x288xbf16, #tpu.memory_space<vmem>>, %arg3: memref<32x288xbf16, #tpu.memory_space<vmem>>, %arg4: memref<1x32x256xf32, #tpu.memory_space<vmem>>) attributes {dimension_semantics = [#tpu.dimension_semantics<parallel>], iteration_bounds = array<i64: 2>, scalar_prefetch = 0 : i64, scratch_operands = 0 : i64, tpu.core_type = #tpu.core_type<tc>, window_params = [{transform_indices = @transform_0, window_bounds = array<i64: 1, 32, 256>}, {pipeline_mode = #tpu.pipeline_mode<synchronous>, transform_indices = @transform_1, window_bounds = array<i64: 32, 288>}, {pipeline_mode = #tpu.pipeline_mode<synchronous>, transform_indices = @transform_2, window_bounds = array<i64: 32, 288>}, {transform_indices = @transform_3, window_bounds = array<i64: 1, 32, 256>}]} {
    %0 = tpu.iota {dimensions = array<i32: 1>} : vector<1x256xi32>
    %c4_i32 = arith.constant 4 : i32
    %1 = vector.broadcast %c4_i32 : i32 to vector<1x256xi32>
    %2 = arith.shrsi %0, %1 : vector<1x256xi32>
    %c15_i32 = arith.constant 15 : i32
    %3 = vector.broadcast %c15_i32 : i32 to vector<1x256xi32>
    %4 = arith.andi %0, %3 : vector<1x256xi32>
    %c0_i32 = arith.constant 0 : i32
    %5 = vector.broadcast %c0_i32 : i32 to vector<1x256xi32>
    %6 = arith.cmpi sgt, %4, %5 : vector<1x256xi32>
    %c15_i32_0 = arith.constant 15 : i32
    %7 = vector.broadcast %c15_i32_0 : i32 to vector<1x256xi32>
    %8 = arith.cmpi slt, %4, %7 : vector<1x256xi32>
    %c0_i32_1 = arith.constant 0 : i32
    %9 = vector.broadcast %c0_i32_1 : i32 to vector<1x256xi32>
    %10 = arith.cmpi sgt, %2, %9 : vector<1x256xi32>
    %c15_i32_2 = arith.constant 15 : i32
    %11 = vector.broadcast %c15_i32_2 : i32 to vector<1x256xi32>
    %12 = arith.cmpi slt, %2, %11 : vector<1x256xi32>
    %c0 = arith.constant 0 : index
    %c0_3 = arith.constant 0 : index
    %c0_4 = arith.constant 0 : index
    %13 = vector.load %arg1[%c0, %c0_3, %c0_4] : memref<1x32x256xf32, #tpu.memory_space<vmem>>, vector<1x32x256xf32>
    %14 = vector.shape_cast %13 : vector<1x32x256xf32> to vector<32x256xf32>
    %c17_i32 = arith.constant 17 : i32
    %15 = tpu.dynamic_rotate %14 by %c17_i32 dim 1 : vector<32x256xf32>, i32 -> vector<32x256xf32>
    %16 = arith.andi %10, %6 : vector<1x256xi1>
    %cst = arith.constant 0.000000e+00 : f32
    %17 = vector.shape_cast %16 : vector<1x256xi1> to vector<1x256xi1>
    %18 = vector.broadcast %17 : vector<1x256xi1> to vector<32x256xi1>
    %19 = vector.broadcast %cst : f32 to vector<32x256xf32>
    %20 = arith.select %18, %15, %19 : vector<32x256xi1>, vector<32x256xf32>
    %21 = arith.truncf %20 : vector<32x256xf32> to vector<32x256xbf16>
    %c16_i32 = arith.constant 16 : i32
    %22 = tpu.dynamic_rotate %14 by %c16_i32 dim 1 : vector<32x256xf32>, i32 -> vector<32x256xf32>
    %cst_5 = arith.constant 0.000000e+00 : f32
    %23 = vector.shape_cast %10 : vector<1x256xi1> to vector<1x256xi1>
    %24 = vector.broadcast %23 : vector<1x256xi1> to vector<32x256xi1>
    %25 = vector.broadcast %cst_5 : f32 to vector<32x256xf32>
    %26 = arith.select %24, %22, %25 : vector<32x256xi1>, vector<32x256xf32>
    %27 = arith.truncf %26 : vector<32x256xf32> to vector<32x256xbf16>
    %c15_i32_6 = arith.constant 15 : i32
    %28 = tpu.dynamic_rotate %14 by %c15_i32_6 dim 1 : vector<32x256xf32>, i32 -> vector<32x256xf32>
    %29 = arith.andi %10, %8 : vector<1x256xi1>
    %cst_7 = arith.constant 0.000000e+00 : f32
    %30 = vector.shape_cast %29 : vector<1x256xi1> to vector<1x256xi1>
    %31 = vector.broadcast %30 : vector<1x256xi1> to vector<32x256xi1>
    %32 = vector.broadcast %cst_7 : f32 to vector<32x256xf32>
    %33 = arith.select %31, %28, %32 : vector<32x256xi1>, vector<32x256xf32>
    %34 = arith.truncf %33 : vector<32x256xf32> to vector<32x256xbf16>
    %c1_i32 = arith.constant 1 : i32
    %35 = tpu.dynamic_rotate %14 by %c1_i32 dim 1 : vector<32x256xf32>, i32 -> vector<32x256xf32>
    %cst_8 = arith.constant 0.000000e+00 : f32
    %36 = vector.shape_cast %6 : vector<1x256xi1> to vector<1x256xi1>
    %37 = vector.broadcast %36 : vector<1x256xi1> to vector<32x256xi1>
    %38 = vector.broadcast %cst_8 : f32 to vector<32x256xf32>
    %39 = arith.select %37, %35, %38 : vector<32x256xi1>, vector<32x256xf32>
    %40 = arith.truncf %39 : vector<32x256xf32> to vector<32x256xbf16>
    %41 = arith.truncf %14 : vector<32x256xf32> to vector<32x256xbf16>
    %c255_i32 = arith.constant 255 : i32
    %42 = tpu.dynamic_rotate %14 by %c255_i32 dim 1 : vector<32x256xf32>, i32 -> vector<32x256xf32>
    %cst_9 = arith.constant 0.000000e+00 : f32
    %43 = vector.shape_cast %8 : vector<1x256xi1> to vector<1x256xi1>
    %44 = vector.broadcast %43 : vector<1x256xi1> to vector<32x256xi1>
    %45 = vector.broadcast %cst_9 : f32 to vector<32x256xf32>
    %46 = arith.select %44, %42, %45 : vector<32x256xi1>, vector<32x256xf32>
    %47 = arith.truncf %46 : vector<32x256xf32> to vector<32x256xbf16>
    %c241_i32 = arith.constant 241 : i32
    %48 = tpu.dynamic_rotate %14 by %c241_i32 dim 1 : vector<32x256xf32>, i32 -> vector<32x256xf32>
    %49 = arith.andi %12, %6 : vector<1x256xi1>
    %cst_10 = arith.constant 0.000000e+00 : f32
    %50 = vector.shape_cast %49 : vector<1x256xi1> to vector<1x256xi1>
    %51 = vector.broadcast %50 : vector<1x256xi1> to vector<32x256xi1>
    %52 = vector.broadcast %cst_10 : f32 to vector<32x256xf32>
    %53 = arith.select %51, %48, %52 : vector<32x256xi1>, vector<32x256xf32>
    %54 = arith.truncf %53 : vector<32x256xf32> to vector<32x256xbf16>
    %c240_i32 = arith.constant 240 : i32
    %55 = tpu.dynamic_rotate %14 by %c240_i32 dim 1 : vector<32x256xf32>, i32 -> vector<32x256xf32>
    %cst_11 = arith.constant 0.000000e+00 : f32
    %56 = vector.shape_cast %12 : vector<1x256xi1> to vector<1x256xi1>
    %57 = vector.broadcast %56 : vector<1x256xi1> to vector<32x256xi1>
    %58 = vector.broadcast %cst_11 : f32 to vector<32x256xf32>
    %59 = arith.select %57, %55, %58 : vector<32x256xi1>, vector<32x256xf32>
    %60 = arith.truncf %59 : vector<32x256xf32> to vector<32x256xbf16>
    %c239_i32 = arith.constant 239 : i32
    %61 = tpu.dynamic_rotate %14 by %c239_i32 dim 1 : vector<32x256xf32>, i32 -> vector<32x256xf32>
    %62 = arith.andi %12, %8 : vector<1x256xi1>
    %cst_12 = arith.constant 0.000000e+00 : f32
    %63 = vector.shape_cast %62 : vector<1x256xi1> to vector<1x256xi1>
    %64 = vector.broadcast %63 : vector<1x256xi1> to vector<32x256xi1>
    %65 = vector.broadcast %cst_12 : f32 to vector<32x256xf32>
    %66 = arith.select %64, %61, %65 : vector<32x256xi1>, vector<32x256xf32>
    %67 = arith.truncf %66 : vector<32x256xf32> to vector<32x256xbf16>
    %68 = tpu.concatenate %21, %27, %34, %40, %41, %47, %54, %60, %67 in 0 : vector<32x256xbf16>, vector<32x256xbf16>, vector<32x256xbf16>, vector<32x256xbf16>, vector<32x256xbf16>, vector<32x256xbf16>, vector<32x256xbf16>, vector<32x256xbf16>, vector<32x256xbf16> -> vector<288x256xbf16>
    %c0_13 = arith.constant 0 : index
    %c0_14 = arith.constant 0 : index
    %69 = vector.load %arg2[%c0_13, %c0_14] : memref<32x288xbf16, #tpu.memory_space<vmem>>, vector<32x288xbf16>
    %cst_15 = arith.constant dense<0.000000e+00> : vector<32x256xf32>
    %70 = tpu.matmul %69, %68, %cst_15 {dimension_numbers = #tpu.dot_dimension_numbers<[1], [0], [0], [1], [0, 0, 1, 1], [], []>} : vector<32x288xbf16>, vector<288x256xbf16>, vector<32x256xf32> -> vector<32x256xf32>
    %cst_16 = arith.constant dense<0.000000e+00> : vector<32xf32>
    %71 = vector.multi_reduction <add>, %70, %cst_16 [1] : vector<32x256xf32> to vector<32xf32>
    %72 = vector.shape_cast %71 : vector<32xf32> to vector<32x1xf32>
    %cst_17 = arith.constant 2.560000e+02 : f32
    %73 = vector.broadcast %cst_17 : f32 to vector<32x1xf32>
    %74 = arith.divf %72, %73 : vector<32x1xf32>
    %75 = vector.broadcast %74 : vector<32x1xf32> to vector<32x256xf32>
    %76 = arith.subf %70, %75 : vector<32x256xf32>
    %77 = arith.mulf %76, %76 : vector<32x256xf32>
    %cst_18 = arith.constant dense<0.000000e+00> : vector<32xf32>
    %78 = vector.multi_reduction <add>, %77, %cst_18 [1] : vector<32x256xf32> to vector<32xf32>
    %79 = vector.shape_cast %78 : vector<32xf32> to vector<32x1xf32>
    %cst_19 = arith.constant 2.560000e+02 : f32
    %80 = vector.broadcast %cst_19 : f32 to vector<32x1xf32>
    %81 = arith.divf %79, %80 : vector<32x1xf32>
    %cst_20 = arith.constant 9.99999974E-6 : f32
    %82 = vector.broadcast %cst_20 : f32 to vector<32x1xf32>
    %83 = arith.addf %81, %82 : vector<32x1xf32>
    %84 = math.rsqrt %83 : vector<32x1xf32>
    %85 = vector.broadcast %84 : vector<32x1xf32> to vector<32x256xf32>
    %86 = arith.mulf %76, %85 : vector<32x256xf32>
    %cst_21 = arith.constant 0.000000e+00 : f32
    %87 = vector.broadcast %cst_21 : f32 to vector<32x256xf32>
    %88 = arith.maximumf %86, %87 : vector<32x256xf32>
    %c17_i32_22 = arith.constant 17 : i32
    %89 = tpu.dynamic_rotate %88 by %c17_i32_22 dim 1 : vector<32x256xf32>, i32 -> vector<32x256xf32>
    %90 = arith.andi %10, %6 : vector<1x256xi1>
    %cst_23 = arith.constant 0.000000e+00 : f32
    %91 = vector.shape_cast %90 : vector<1x256xi1> to vector<1x256xi1>
    %92 = vector.broadcast %91 : vector<1x256xi1> to vector<32x256xi1>
    %93 = vector.broadcast %cst_23 : f32 to vector<32x256xf32>
    %94 = arith.select %92, %89, %93 : vector<32x256xi1>, vector<32x256xf32>
    %95 = arith.truncf %94 : vector<32x256xf32> to vector<32x256xbf16>
    %c16_i32_24 = arith.constant 16 : i32
    %96 = tpu.dynamic_rotate %88 by %c16_i32_24 dim 1 : vector<32x256xf32>, i32 -> vector<32x256xf32>
    %cst_25 = arith.constant 0.000000e+00 : f32
    %97 = vector.shape_cast %10 : vector<1x256xi1> to vector<1x256xi1>
    %98 = vector.broadcast %97 : vector<1x256xi1> to vector<32x256xi1>
    %99 = vector.broadcast %cst_25 : f32 to vector<32x256xf32>
    %100 = arith.select %98, %96, %99 : vector<32x256xi1>, vector<32x256xf32>
    %101 = arith.truncf %100 : vector<32x256xf32> to vector<32x256xbf16>
    %c15_i32_26 = arith.constant 15 : i32
    %102 = tpu.dynamic_rotate %88 by %c15_i32_26 dim 1 : vector<32x256xf32>, i32 -> vector<32x256xf32>
    %103 = arith.andi %10, %8 : vector<1x256xi1>
    %cst_27 = arith.constant 0.000000e+00 : f32
    %104 = vector.shape_cast %103 : vector<1x256xi1> to vector<1x256xi1>
    %105 = vector.broadcast %104 : vector<1x256xi1> to vector<32x256xi1>
    %106 = vector.broadcast %cst_27 : f32 to vector<32x256xf32>
    %107 = arith.select %105, %102, %106 : vector<32x256xi1>, vector<32x256xf32>
    %108 = arith.truncf %107 : vector<32x256xf32> to vector<32x256xbf16>
    %c1_i32_28 = arith.constant 1 : i32
    %109 = tpu.dynamic_rotate %88 by %c1_i32_28 dim 1 : vector<32x256xf32>, i32 -> vector<32x256xf32>
    %cst_29 = arith.constant 0.000000e+00 : f32
    %110 = vector.shape_cast %6 : vector<1x256xi1> to vector<1x256xi1>
    %111 = vector.broadcast %110 : vector<1x256xi1> to vector<32x256xi1>
    %112 = vector.broadcast %cst_29 : f32 to vector<32x256xf32>
    %113 = arith.select %111, %109, %112 : vector<32x256xi1>, vector<32x256xf32>
    %114 = arith.truncf %113 : vector<32x256xf32> to vector<32x256xbf16>
    %115 = arith.truncf %88 : vector<32x256xf32> to vector<32x256xbf16>
    %c255_i32_30 = arith.constant 255 : i32
    %116 = tpu.dynamic_rotate %88 by %c255_i32_30 dim 1 : vector<32x256xf32>, i32 -> vector<32x256xf32>
    %cst_31 = arith.constant 0.000000e+00 : f32
    %117 = vector.shape_cast %8 : vector<1x256xi1> to vector<1x256xi1>
    %118 = vector.broadcast %117 : vector<1x256xi1> to vector<32x256xi1>
    %119 = vector.broadcast %cst_31 : f32 to vector<32x256xf32>
    %120 = arith.select %118, %116, %119 : vector<32x256xi1>, vector<32x256xf32>
    %121 = arith.truncf %120 : vector<32x256xf32> to vector<32x256xbf16>
    %c241_i32_32 = arith.constant 241 : i32
    %122 = tpu.dynamic_rotate %88 by %c241_i32_32 dim 1 : vector<32x256xf32>, i32 -> vector<32x256xf32>
    %123 = arith.andi %12, %6 : vector<1x256xi1>
    %cst_33 = arith.constant 0.000000e+00 : f32
    %124 = vector.shape_cast %123 : vector<1x256xi1> to vector<1x256xi1>
    %125 = vector.broadcast %124 : vector<1x256xi1> to vector<32x256xi1>
    %126 = vector.broadcast %cst_33 : f32 to vector<32x256xf32>
    %127 = arith.select %125, %122, %126 : vector<32x256xi1>, vector<32x256xf32>
    %128 = arith.truncf %127 : vector<32x256xf32> to vector<32x256xbf16>
    %c240_i32_34 = arith.constant 240 : i32
    %129 = tpu.dynamic_rotate %88 by %c240_i32_34 dim 1 : vector<32x256xf32>, i32 -> vector<32x256xf32>
    %cst_35 = arith.constant 0.000000e+00 : f32
    %130 = vector.shape_cast %12 : vector<1x256xi1> to vector<1x256xi1>
    %131 = vector.broadcast %130 : vector<1x256xi1> to vector<32x256xi1>
    %132 = vector.broadcast %cst_35 : f32 to vector<32x256xf32>
    %133 = arith.select %131, %129, %132 : vector<32x256xi1>, vector<32x256xf32>
    %134 = arith.truncf %133 : vector<32x256xf32> to vector<32x256xbf16>
    %c239_i32_36 = arith.constant 239 : i32
    %135 = tpu.dynamic_rotate %88 by %c239_i32_36 dim 1 : vector<32x256xf32>, i32 -> vector<32x256xf32>
    %136 = arith.andi %12, %8 : vector<1x256xi1>
    %cst_37 = arith.constant 0.000000e+00 : f32
    %137 = vector.shape_cast %136 : vector<1x256xi1> to vector<1x256xi1>
    %138 = vector.broadcast %137 : vector<1x256xi1> to vector<32x256xi1>
    %139 = vector.broadcast %cst_37 : f32 to vector<32x256xf32>
    %140 = arith.select %138, %135, %139 : vector<32x256xi1>, vector<32x256xf32>
    %141 = arith.truncf %140 : vector<32x256xf32> to vector<32x256xbf16>
    %142 = tpu.concatenate %95, %101, %108, %114, %115, %121, %128, %134, %141 in 0 : vector<32x256xbf16>, vector<32x256xbf16>, vector<32x256xbf16>, vector<32x256xbf16>, vector<32x256xbf16>, vector<32x256xbf16>, vector<32x256xbf16>, vector<32x256xbf16>, vector<32x256xbf16> -> vector<288x256xbf16>
    %c0_38 = arith.constant 0 : index
    %c0_39 = arith.constant 0 : index
    %143 = vector.load %arg3[%c0_38, %c0_39] : memref<32x288xbf16, #tpu.memory_space<vmem>>, vector<32x288xbf16>
    %cst_40 = arith.constant dense<0.000000e+00> : vector<32x256xf32>
    %144 = tpu.matmul %143, %142, %cst_40 {dimension_numbers = #tpu.dot_dimension_numbers<[1], [0], [0], [1], [0, 0, 1, 1], [], []>} : vector<32x288xbf16>, vector<288x256xbf16>, vector<32x256xf32> -> vector<32x256xf32>
    %cst_41 = arith.constant dense<0.000000e+00> : vector<32xf32>
    %145 = vector.multi_reduction <add>, %144, %cst_41 [1] : vector<32x256xf32> to vector<32xf32>
    %146 = vector.shape_cast %145 : vector<32xf32> to vector<32x1xf32>
    %cst_42 = arith.constant 2.560000e+02 : f32
    %147 = vector.broadcast %cst_42 : f32 to vector<32x1xf32>
    %148 = arith.divf %146, %147 : vector<32x1xf32>
    %149 = vector.broadcast %148 : vector<32x1xf32> to vector<32x256xf32>
    %150 = arith.subf %144, %149 : vector<32x256xf32>
    %151 = arith.mulf %150, %150 : vector<32x256xf32>
    %cst_43 = arith.constant dense<0.000000e+00> : vector<32xf32>
    %152 = vector.multi_reduction <add>, %151, %cst_43 [1] : vector<32x256xf32> to vector<32xf32>
    %153 = vector.shape_cast %152 : vector<32xf32> to vector<32x1xf32>
    %cst_44 = arith.constant 2.560000e+02 : f32
    %154 = vector.broadcast %cst_44 : f32 to vector<32x1xf32>
    %155 = arith.divf %153, %154 : vector<32x1xf32>
    %cst_45 = arith.constant 9.99999974E-6 : f32
    %156 = vector.broadcast %cst_45 : f32 to vector<32x1xf32>
    %157 = arith.addf %155, %156 : vector<32x1xf32>
    %158 = math.rsqrt %157 : vector<32x1xf32>
    %159 = vector.broadcast %158 : vector<32x1xf32> to vector<32x256xf32>
    %160 = arith.mulf %150, %159 : vector<32x256xf32>
    %161 = arith.addf %14, %160 : vector<32x256xf32>
    %c0_46 = arith.constant 0 : index
    %c0_47 = arith.constant 0 : index
    %c0_48 = arith.constant 0 : index
    %162 = vector.load %arg4[%c0_46, %c0_47, %c0_48] : memref<1x32x256xf32, #tpu.memory_space<vmem>>, vector<1x32x256xf32>
    %163 = vector.shape_cast %162 : vector<1x32x256xf32> to vector<32x256xf32>
    %164 = vector.shape_cast %161 : vector<32x256xf32> to vector<1x32x256xf32>
    tpu.vector_store %arg4[%c0_46, %c0_47, %c0_48], %164 {strides = array<i32>} : memref<1x32x256xf32, #tpu.memory_space<vmem>>, vector<1x32x256xf32>,
    return
  }
  func.func @transform_0(%arg0: i32) -> (i32, i32, i32) {
    %c0_i32 = arith.constant 0 : i32
    %c0_i32_0 = arith.constant 0 : i32
    %c0_i32_1 = arith.constant 0 : i32
    return %arg0, %c0_i32, %c0_i32_0 : i32, i32, i32
  }
  func.func @transform_1(%arg0: i32) -> (i32, i32) {
    %c0_i32 = arith.constant 0 : i32
    %c0_i32_0 = arith.constant 0 : i32
    %c0_i32_1 = arith.constant 0 : i32
    return %c0_i32, %c0_i32_0 : i32, i32
  }
  func.func @transform_2(%arg0: i32) -> (i32, i32) {
    %c0_i32 = arith.constant 0 : i32
    %c0_i32_0 = arith.constant 0 : i32
    %c0_i32_1 = arith.constant 0 : i32
    return %c0_i32, %c0_i32_0 : i32, i32
  }
  func.func @transform_3(%arg0: i32) -> (i32, i32, i32) {
    %c0_i32 = arith.constant 0 : i32
    %c0_i32_0 = arith.constant 0 : i32
    %c0_i32_1 = arith.constant 0 : i32
    return %arg0, %c0_i32, %c0_i32_0 : i32, i32, i32
  }
}

</mosaic_0001>

<bundles_post_ra>
// kernel: tpu_custom_call.1
= control target key start
LH: loop header
LB: loop body
LE: loop exit
PB: predicated region body
PF: predicated region fallthrough
CT: control target
= control target key end

     0   :  { %8 = vsyncpa [#allocation3], 0  ;;  %s3214_s0 = inlined_call_operand.hbm [shape: f32[2,32,256], index: 0, kind: input, shape index: {}]   ;;  %s3215_s1 = inlined_call_operand.hbm [shape: bf16[32,288], index: 1, kind: input, shape index: {}]   ;;  %s3216_s2 = inlined_call_operand.hbm [shape: bf16[32,288], index: 2, kind: input, shape index: {}]   ;;  %s3217_s3 = inlined_call_operand.hbm [shape: f32[2,32,256], index: 3, kind: output, shape index: {}]  }
   0x1   :  { %10 = vsyncpa [#allocation3 + $0x1], 0 }
   0x2   :  { %11 = vsyncpa [#allocation6], 0 }
   0x3   :  { %12 = vsyncpa [#allocation4], 0 }
   0x4   :  { %14 = vsyncpa [#allocation4 + $0x1], 0  ;;  %s2291_s12 = smov 0   ;;  %s2293_s13 = smov 0  }
   0x5   :  { %s2295_s14 = smov 0   ;;  %s2297_s15 = smov 0  }
   0x6 LB: > { %s2312_s16 = sadd.s32 4294967295, %s2251_s15   ;;  %s1434_s17 = sadd.s32 4294967294, %s2251_s15   ;;  %s2251_s15 = sphi %s2297_s15, %s3373_s15   ;;  %s2247_s14 = sphi %s2295_s14, %s3372_s14   ;;  %s2243_s13 = sphi %s2293_s13, %s3371_s13   ;;  %s2239_s12 = sphi %s2291_s12, %s3370_s12  }
   0x7   : > { %p40_p0 = scmp.ne.s32.totalorder %s2243_s13, %s2239_s12  ;;  %p3218_p1 = scmp.eq.s32.totalorder %s2312_s16, 0 }
   0x8   : > { %p112_p3 = scmp.eq.s32.totalorder %s1434_s17, 1  ;;  %p1435_p5 = scmp.ge.s32.totalorder %s2251_s15, 1 }
   0x9   : > { %p2321_p4 = por %p3218_p1, %p40_p0  ;;  %p119_p7 = scmp.lt.s32.totalorder %s2251_s15, 3 }
   0xa   : > { %p2326_p6 = por %p112_p3, %p40_p0  ;;  %s2253_s21 = smov [#allocation5]  }
   0xb   : > { %s3239_s18 = scalar_select %p2321_p4, 1, 0 }
   0xc   : > { %s3240_s19 = scalar_select %p2326_p6, 1, 0 }
   0xd   : > { %p2331_p8 = pnand %p1435_p5, %p119_p7  ;;  %s131_s22 = sshll.u32 %s2253_s21, 4  ;;  %s132_s22 = int_to_ptr.vmem [resolvable:$true] %s131_s22 }
   0xe   : > { %s2254_s24 = smov [#allocation7]   ;;  %s2114_s26 = scalar_lea.vmem %s132_s22, 768 }
   0xf   : > { %s3241_s20 = scalar_select %p2331_p8, 1, 0 }
  0x10   : > { %p1674_p9 = pneg %p2331_p8  ;;  %s144_s25 = sshll.u32 %s2254_s24, 4  ;;  %s145_s25 = int_to_ptr.vmem [resolvable:$true] %s144_s25 }
  0x11   : > { %p2115_p13 = scmp.ne.s32.totalorder %s132_s22, %s2114_s26  ;;  %p2122_p5 = scmp.lt.s32.totalorder %s132_s22, %s132_s22 }
  0x12   : > { %p2340_p11 = pnand %p1674_p9, %p3218_p1  ;;  %p2123_p7 = scmp.lt.s32.totalorder %s2114_s26, %s2114_s26 }
  0x14   : > { %p2105_p12 = pneg %p2340_p11  ;;  %p2124_p10 = por %p2123_p7, %p2122_p5 }
  0x16   : > { %p2117_p0 = pnand %p2115_p13, %p2105_p12 }
  0x18   : > { %p2118_p3 = pneg %p2117_p0 }
  0x1a   : > { %p2125_p9 = pnand %p2124_p10, %p2118_p3 }
  0x1c   : > { %2128 = shalt.err (!%p2125_p9)
}
  0x1d   : > { %s2255_s27 = smov 192   ;;  %s2256_s28 = smov 12  }
  0x1e   : > { %1677 = dma.hbm_to_vmem [thread:$0]  (!%p2340_p11), %s3215_s1, 768, %s132_s22, [#allocation6], %s2255_s27, %s2255_s27, %s2256_s28  }
  0x1f   : > { %s2140_s4 = scalar_lea.vmem %s145_s25, 768  ;;  %p2148_p2 = scmp.lt.s32.totalorder %s145_s25, %s145_s25 }
  0x20   : > { %p2141_p1 = scmp.ne.s32.totalorder %s145_s25, %s2140_s4  ;;  %p2149_p6 = scmp.lt.s32.totalorder %s2140_s4, %s2140_s4 }
  0x22   : > { %p2143_p13 = pnand %p2141_p1, %p2105_p12  ;;  %p2150_p5 = por %p2149_p6, %p2148_p2 }
  0x24   : > { %p2144_p0 = pneg %p2143_p13 }
  0x26   : > { %p2151_p10 = pnand %p2150_p5, %p2144_p0 }
  0x28   : > { %2154 = shalt.err (!%p2151_p10)
}
  0x29   : > { %1680 = dma.hbm_to_vmem [thread:$0]  (!%p2340_p11), %s3216_s2, 768, %s145_s25, [#allocation6], %s2255_s27, %s2255_s27, %s2256_s28  }
  0x2a   : > { %s2363_s7 = sadd.s32 1, %s2251_s15   ;;  %s27_s8 = sadd.s32 1, %s2247_s14 }
  0x2b   : > { %s24_s9 = ssub.s32 %s2251_s15, %s2363_s7  ;;  %p34_p1 = scmp.ne.s32.totalorder %s2247_s14, %s2243_s13 }
  0x2c   : > { %p25_p2 = scmp.eq.s32.totalorder %s24_s9, 0  ;;  %p35_p6 = scmp.eq.s32.totalorder %s2251_s15, 0 }
  0x2d   : > { %p3243_p12 = scmp.eq.s32.totalorder %s2312_s16, 1  ;;  %p1691_p7 = scmp.lt.s32.totalorder %s2251_s15, 2 }
  0x2e   : > { %s2379_s11 = scalar_select %p25_p2, %s2247_s14, %s27_s8  }
  0x2f   : > { %p2373_p3 = por %p3243_p12, %p34_p1  ;;  %p36_p9 = por %p35_p6, %p34_p1 }
  0x30   : > { %s158_s17 = sand.u32 1, %s2247_s14   ;;  %s1660_s22 = sshll.u32 %s2251_s15, 10 }
  0x31   : > { %s3244_s10 = scalar_select %p2373_p3, 1, 0 }
  0x32   : > { %s1439_s21 = sshll.u32 %s158_s17, 6  ;;  %s2386_s25 = scalar_lea.hbm %s3214_s0, %s1660_s22 }
  0x33   : > { %s162_s26 = scalar_lea.vmem [#allocation2], %s1439_s21  ;;  %p2390_p11 = pnand %p1691_p7, %p36_p9 }
  0x34   : > { %s169_s27 = sshll.u32 %s162_s26, 4  ;;  %s2394_s29 = scalar_lea.sflag [#allocation3], %s158_s17  ;;  %s2388_s27 = int_to_ptr.vmem [resolvable:$true] %s169_s27 }
  0x35   : > { %s2155_s30 = scalar_lea.hbm %s2386_s25, 1024  ;;  %p2157_p0 = pneg %p2390_p11 }
  0x36   : > { %p2156_p13 = scmp.ne.s32.totalorder %s2386_s25, %s2155_s30  ;;  %s2160_s6 = scalar_lea.hbm %s3214_s0, 2048 }
  0x37   : > { %p2161_p1 = scmp.lt.s32.totalorder %s2386_s25, %s3214_s0  ;;  %p2162_p2 = scmp.lt.s32.totalorder %s2160_s6, %s2155_s30 }
  0x38   : > { %p2158_p5 = pnand %p2157_p0, %p2156_p13 }
  0x39   : > { %p2163_p6 = por %p2162_p2, %p2161_p1 }
  0x3a   : > { %p2159_p10 = pneg %p2158_p5 }
  0x3c   : > { %p2164_p12 = pnand %p2163_p6, %p2159_p10 }
  0x3e   : > { %2167 = shalt.err (!%p2164_p12)
}
  0x3f   : > { %s2168_s17 = scalar_lea.vmem %s2388_s27, 1024  ;;  %s2257_s21 = smov [#allocation2]  }
  0x40   : > { %p2169_p7 = scmp.ne.s32.totalorder %s2388_s27, %s2168_s17  ;;  %s2173_s22 = sshll.u32 %s2257_s21, 4  ;;  %s2174_s22 = int_to_ptr.vmem [resolvable:$false] %s2173_s22 }
  0x41   : > { %s2175_s23 = scalar_lea.vmem %s2174_s22, 2048  ;;  %p2176_p5 = scmp.lt.s32.totalorder %s2388_s27, %s2174_s22 }
  0x42   : > { %p2171_p9 = pnand %p2169_p7, %p2157_p0  ;;  %p2177_p3 = scmp.lt.s32.totalorder %s2175_s23, %s2168_s17 }
  0x44   : > { %p2172_p13 = pneg %p2171_p9  ;;  %p2178_p4 = por %p2177_p3, %p2176_p5 }
  0x46   : > { %p2179_p8 = pnand %p2178_p4, %p2172_p13 }
  0x48   : > { %2182 = shalt.err (!%p2179_p8)
}
  0x49   : > { %s2258_s24 = smov 256   ;;  %s2259_s26 = smov 16  }
  0x4a   : > { %1684 = dma.hbm_to_vmem [thread:$0]  (!%p2390_p11), %s2386_s25, 1024, %s2388_s27, %s2394_s29, %s2258_s24, %s2258_s24, %s2259_s26  }
  0x4b   : > { %p3246_p0 = scmp.ne.s32.totalorder %s3241_s20, 0 }
  0x4c   : > { %s2418_s30 = sand.u32 (!%p3246_p0), 1, %s2243_s13   ;;  %p3247_p4 = scmp.ne.s32.totalorder (!%p3246_p0), %s3239_s18, 0 }
  0x4d   : > { %181 = sbr.rel (%p3246_p0) target bundleno = 1519 (0x5ef), region = 32  ;;  %s1443_s4 = sshll.u32 (!%p3246_p0), %s2418_s30, 6 }
  0x4e   : > { %s184_s5 = scalar_lea.sflag (!%p3246_p0), [#allocation3], %s2418_s30  ;;  %s2424_s6 = scalar_lea.vmem (!%p3246_p0), [#allocation2], %s1443_s4 }
  0x52   : > { %2226 = dma.done.wait (%p3247_p4), %s184_s5, 1024  }
  0x53   : > { %2228 = vsyncadd (%p3247_p4), %s184_s5, 4294966272  ;;  %p3248_p8 = scmp.eq.s32.totalorder %s2312_s16, 0 }
  0x55   : > { %2230 = dma.done.wait (%p3248_p8), [#allocation6], 1536   ;;  %p3249_p3 = pmov %p3248_p8 }
  0x56   : > { %v2435_v0 = vld [vmem:[%s2424_s6 + $0x20] sm:$0xff]  ;;  %v2438_v1 = vld [vmem:[%s2424_s6 + $0x30] sm:$0xff]  ;;  %v2449_v5 = vld [vmem:[%s2424_s6 + $0x28] sm:$0xff]  ;;  %s2260_s18 = smov 1   ;;  %s2261_s20 = smov 15   ;;  %v2268_v12 = vmov 0   ;;  %v219_v14 = vlaneseq }
  0x57   : > { %2232 = vsyncadd (%p3249_p3), [#allocation6], 4294965760  ;;  %v2441_v2 = vld [vmem:[%s2424_s6] sm:$0xff]  ;;  %v1743_v3 = vpack.i.bf16 %v2438_v1, %v2435_v0  ;;  %v2446_v4 = vld [vmem:[%s2424_s6 + $0x10] sm:$0xff]  ;;  %s2262_s25 = smov 16   ;;  %s2263_s27 = smov 17   ;;  %712 = vmatprep.mubr.bf16.mxu1 %v2268_v12 }
  0x58   : > { %v2452_v6 = vld [vmem:[%s2424_s6 + $0x38] sm:$0xff]  ;;  %v1753_v7 = vpack.i.bf16 %v2446_v4, %v2441_v2  ;;  %v2457_v8 = vld [vmem:[%s2424_s6 + $0x8] sm:$0xff]  ;;  %s2264_s28 = smov 112   ;;  %s2265_s29 = smov 113   ;;  %v2066_v13 = vld [vmem:[#allocation5 + $0x4] ss:$12 sps:$4 sm:$0xff]  }
  0x59   : > { %v2460_v9 = vld [vmem:[%s2424_s6 + $0x18] sm:$0xff]  ;;  %1744 = vrot.lane.b32.xlu0 %v1743_v3, %s2260_s18  ;;  %v1748_v10 = vpack.i.bf16 %v2452_v6, %v2449_v5  ;;  %s2266_s8 = smov 127   ;;  %s2267_s9 = smov 111   ;;  %659 = vmatprep.mubr.bf16.mxu0 %v2066_v13  ;;  %v2499_v15 = vand.u32 127, %v219_v14 }
  0x5a   : > { %1754 = vrot.lane.b32.xlu1 %v1753_v7, %s2260_s18  ;;  %v1758_v11 = vpack.i.bf16 %v2460_v9, %v2457_v8  ;;  %s3147_s17 = scalar_lea.vmem [#allocation8], %s1443_s4  ;;  %s1661_s21 = sshll.u32 %s2312_s16, 10 }
  0x5b   : > { %v2502_v16 = vadd.s32 128, %v2499_v15  ;;  %v224_v18 = vand.u32 15, %v2499_v15  ;;  %vm3224_vm0 = vcmp.lt.s32.totalorder %v2499_v15, 1  ;;  %v222_v34 = vshra.s32 %v2499_v15, 4  ;;  %s1342_s22 = sshll.u32 %s3147_s17, 4  ;;  %s3164_s26 = scalar_lea.hbm %s3217_s3, %s1661_s21  ;;  %s3168_s22 = int_to_ptr.vmem [resolvable:$true] %s1342_s22 }
  0x5c   : > { %vm3222_vm3 = vcmp.lt.s32.totalorder %v2499_v15, 15  ;;  %vm3223_vm13 = vcmp.lt.s32.totalorder %v2499_v15, 16  ;;  %s1329_s16 = scalar_lea.sflag [#allocation4], %s2418_s30  ;;  %s2183_s4 = scalar_lea.vmem %s3168_s22, 1024 }
  0x5d   : > { %1749 = vrot.lane.b32.xlu0 %v1748_v10, %s2260_s18  ;;  %v225_v20 = vand.u32 15, %v2502_v16  ;;  %vm2507_vm1 = vcmp.gt.s32.totalorder %v224_v18, 0  ;;  %v223_v25 = vshra.s32 %v2502_v16, 4  ;;  %vm2560_vm9 = vcmp.lt.s32.totalorder %v224_v18, 15  ;;  %p2184_p11 = scmp.ne.s32.totalorder %s3168_s22, %s2183_s4  ;;  %p3367_p10 = scmp.ne.s32.totalorder %s3244_s10, 0 }
  0x5e   : > { %1759 = vrot.lane.b32.xlu1 %v1758_v11, %s2260_s18  ;;  %vm2550_vm7 = vmpackc.low %vm2507_vm1, %vm2507_vm1  ;;  %vm2566_vm10 = vcmp.gt.s32.totalorder %v222_v34, 0  ;;  %s2269_s5 = smov [#allocation8]  }
  0x5f   : > { %vm2512_vm2 = vcmp.gt.s32.totalorder %v225_v20, 0  ;;  %vm2526_vm4 = vcmp.lt.s32.totalorder %v225_v20, 15  ;;  %vm2532_vm5 = vcmp.gt.s32.totalorder %v223_v25, 0  ;;  %vm351_vm12 = vmand %vm2566_vm10, %vm2560_vm9  ;;  %p2185_p1 = pnand %p2184_p11, %p3367_p10 }
  0x60   : > { %vm2543_vm6 = vmpackc.low %vm2512_vm2, %vm2512_vm2 }
  0x61   : > { %1764 = vrot.lane.b32.xlu0 %v1743_v3, %s2261_s20  ;;  %vm352_vm8 = vmand %vm2532_vm5, %vm2526_vm4  ;;  %p2186_p2 = pneg %p2185_p1 }
  0x62   : > { %1769 = vrot.lane.b32.xlu1 %v1748_v10, %s2261_s20  ;;  %vm2592_vm11 = vmpackc.low %vm352_vm8, %vm352_vm8  ;;  %vm3225_vm8 = vcmp.lt.s32.totalorder %v2499_v15, 17 }
  0x63   : > { %vm2619_vm14 = vmpackc.low %vm351_vm12, %vm351_vm12 }
  0x64   : > { %vm2638_vm15 = vmpackc.low %vm2532_vm5, %vm2532_vm5 }
  0x65   : > { %1774 = vrot.lane.b32.xlu0 %v1753_v7, %s2261_s20  ;;  %vm2658_vm12 = vmpackc.low %vm2566_vm10, %vm2566_vm10 }
  0x66   : > { %1779 = vrot.lane.b32.xlu1 %v1758_v11, %s2261_s20 }
  0x69   : > { %1784 = vrot.lane.b32.xlu0 %v1743_v3, %s2262_s25 }
  0x6a   : > { %1789 = vrot.lane.b32.xlu1 %v1748_v10, %s2262_s25 }
  0x6d   : > { %1794 = vrot.lane.b32.xlu0 %v1753_v7, %s2262_s25 }
  0x6e   : > { %1799 = vrot.lane.b32.xlu1 %v1758_v11, %s2262_s25 }
  0x71   : > { %1804 = vrot.lane.b32.xlu0 %v1743_v3, %s2263_s27 }
  0x72   : > { %1809 = vrot.lane.b32.xlu1 %v1748_v10, %s2263_s27 }
  0x75   : > { %1814 = vrot.lane.b32.xlu0 %v1753_v7, %s2263_s27 }
  0x76   : > { %1819 = vrot.lane.b32.xlu1 %v1758_v11, %s2263_s27 }
  0x79   : > { %1824 = vrot.lane.b32.xlu0 %v1743_v3, %s2264_s28 }
  0x7a   : > { %1829 = vrot.lane.b32.xlu1 %v1748_v10, %s2264_s28 }
  0x7d   : > { %1834 = vrot.lane.b32.xlu0 %v1753_v7, %s2264_s28 }
  0x7e   : > { %1839 = vrot.lane.b32.xlu1 %v1758_v11, %s2264_s28 }
  0x81   : > { %1844 = vrot.lane.b32.xlu0 %v1743_v3, %s2265_s29 }
  0x82   : > { %1849 = vrot.lane.b32.xlu1 %v1748_v10, %s2265_s29 }
  0x85   : > { %1854 = vrot.lane.b32.xlu0 %v1753_v7, %s2265_s29 }
  0x86   : > { %1859 = vrot.lane.b32.xlu1 %v1758_v11, %s2265_s29 }
  0x89   : > { %1864 = vrot.lane.b32.xlu0 %v1743_v3, %s2266_s8 }
  0x8a   : > { %1869 = vrot.lane.b32.xlu1 %v1748_v10, %s2266_s8 }
  0x8d   : > { %1874 = vrot.lane.b32.xlu0 %v1753_v7, %s2266_s8 }
  0x8e   : > { %1879 = vrot.lane.b32.xlu1 %v1758_v11, %s2266_s8 }
  0x91   : > { %1884 = vrot.lane.b32.xlu0 %v1743_v3, %s2267_s9 }
  0x92   : > { %1889 = vrot.lane.b32.xlu1 %v1748_v10, %s2267_s9 }
  0x95   : > { %1894 = vrot.lane.b32.xlu0 %v1753_v7, %s2267_s9 }
  0x96   : > { %1899 = vrot.lane.b32.xlu1 %v1758_v11, %s2267_s9 }
  0xcb   : > { %v1745_v17 = vpop.permute.xlu0 %1744 }
  0xcc   : > { %v1755_v19 = vpop.permute.xlu1 %1754  ;;  %v1747_v21 = vunpack.i.h.bf16 %v1745_v17  ;;  %v1746_v22 = vunpack.i.l.bf16 %v1745_v17 }
  0xcd   : > { %v1757_v26 = vunpack.i.h.bf16 %v1755_v19  ;;  %v1756_v27 = vunpack.i.l.bf16 %v1755_v19 }
  0xcf   : > { %v1750_v23 = vpop.permute.xlu0 %1749 }
  0xd0   : > { %v1752_v28 = vunpack.i.h.bf16 %v1750_v23  ;;  %v1751_v29 = vunpack.i.l.bf16 %v1750_v23  ;;  %v1760_v30 = vpop.permute.xlu1 %1759 }
  0xd1   : > { %v1762_v31 = vunpack.i.h.bf16 %v1760_v30  ;;  %v1761_v32 = vunpack.i.l.bf16 %v1760_v30 }
  0xd2   : > { %v388_v35 = vsel %vm3224_vm0, %v1746_v22, %v1751_v29  ;;  %v389_v36 = vsel %vm3224_vm0, %v1747_v21, %v1752_v28  ;;  %v392_v37 = vsel %vm3224_vm0, %v1751_v29, %v1746_v22  ;;  %v393_v38 = vsel %vm3224_vm0, %v1752_v28, %v1747_v21 }
  0xd3   : > { %v1765_v39 = vpop.permute.xlu0 %1764  ;;  %v386_v42 = vsel %vm3224_vm0, %v1756_v27, %v1761_v32  ;;  %v387_v43 = vsel %vm3224_vm0, %v1757_v26, %v1762_v31  ;;  %v1454_v50 = vpack.c.bf16 %v389_v36, %v388_v35  ;;  %v1457_v52 = vpack.c.bf16 %v393_v38, %v392_v37 }
  0xd4   : > { %v1767_v44 = vunpack.i.h.bf16 %v1765_v39  ;;  %v1766_v45 = vunpack.i.l.bf16 %v1765_v39  ;;  %v1770_v46 = vpop.permute.xlu1 %1769  ;;  %v390_v53 = vsel %vm3224_vm0, %v1761_v32, %v1756_v27  ;;  %v391_v56 = vsel %vm3224_vm0, %v1762_v31, %v1757_v26 }
  0xd5   : > { %v1772_v48 = vunpack.i.h.bf16 %v1770_v46  ;;  %v1771_v49 = vunpack.i.l.bf16 %v1770_v46  ;;  %v1460_v57 = vpack.c.bf16 %v387_v43, %v386_v42  ;;  %1455 = vmatprep.subr.msk.bf16.mxu0 %vm2543_vm6, %v1454_v50  ;;  %v1463_v17 = vpack.c.bf16 %v391_v56, %v390_v53 }
  0xd6   : > { %1458 = vmatpush1.bf16.msk.msra.mxu0 %vm2550_vm7, %v1457_v52  ;;  %v3268_v32 = vmov 0  ;;  %v3270_v50 = vmov 0  ;;  %vm3230_vm0 = vcmp.lt.s32.totalorder %v2499_v15, 112 }
  0xd7   : > { %v346_v58 = vsel %vm3222_vm3, %v1767_v44, %v1772_v48  ;;  %v345_v59 = vsel %vm3222_vm3, %v1766_v45, %v1771_v49  ;;  %v1775_v60 = vpop.permute.xlu0 %1774  ;;  %v350_v61 = vsel %vm3222_vm3, %v1772_v48, %v1767_v44  ;;  %v349_v7 = vsel %vm3222_vm3, %v1771_v49, %v1766_v45  ;;  %1461 = vmatprep.subr.msk.bf16.mxu0 %vm2543_vm6, %v1460_v57 }
  0xd8   : > { %v1777_v62 = vunpack.i.h.bf16 %v1775_v60  ;;  %v1776_v63 = vunpack.i.l.bf16 %v1775_v60  ;;  %v1780_v3 = vpop.permute.xlu1 %1779  ;;  %v1466_v10 = vpack.c.bf16 %v346_v58, %v345_v59  ;;  %v1469_v21 = vpack.c.bf16 %v350_v61, %v349_v7 }
  0xd9   : > { %v1782_v11 = vunpack.i.h.bf16 %v1780_v3  ;;  %v1781_v13 = vunpack.i.l.bf16 %v1780_v3  ;;  %v3269_v32 = vsel %vm2619_vm14, 4294967295, %v3268_v32  ;;  %v3271_v50 = vsel %vm2638_vm15, 4294967295, %v3270_v50 }
  0xda   : > { %1464 = vmatpush1.bf16.msk.msra.mxu0 %vm2550_vm7, %v1463_v17 }
  0xdb   : > { %v344_v18 = vsel %vm3222_vm3, %v1777_v62, %v1782_v11  ;;  %v343_v19 = vsel %vm3222_vm3, %v1776_v63, %v1781_v13  ;;  %v1785_v20 = vpop.permute.xlu0 %1784  ;;  %v348_v22 = vsel %vm3222_vm3, %v1782_v11, %v1777_v62  ;;  %v347_v28 = vsel %vm3222_vm3, %v1781_v13, %v1776_v63  ;;  %1467 = vmatprep.subr.msk.bf16.mxu0 %vm2592_vm11, %v1466_v10  ;;  %vm268_vm3 = vmand %vm2532_vm5, %vm2512_vm2 }
  0xdc   : > { %v1787_v23 = vunpack.i.h.bf16 %v1785_v20  ;;  %v1786_v26 = vunpack.i.l.bf16 %v1785_v20  ;;  %v1790_v27 = vpop.permute.xlu1 %1789  ;;  %v1472_v29 = vpack.c.bf16 %v344_v18, %v343_v19  ;;  %v1475_v38 = vpack.c.bf16 %v348_v22, %v347_v28  ;;  %vm2678_vm5 = vmpackc.low %vm268_vm3, %vm268_vm3 }
  0xdd   : > { %v1792_v30 = vunpack.i.h.bf16 %v1790_v27  ;;  %v1791_v31 = vunpack.i.l.bf16 %v1790_v27  ;;  %v3272_v10 = vmov 0  ;;  %v3274_v28 = vmov 0 }
  0xde   : > { %1470 = vmatpush1.bf16.msk.msra.mxu0 %vm2619_vm14, %v1469_v21  ;;  %v3273_v10 = vsel %vm2658_vm12, 4294967295, %v3272_v10  ;;  %v3275_v28 = vsel %vm2678_vm5, 4294967295, %v3274_v28 }
  0xdf   : > { %v305_v35 = vsel %vm3223_vm13, %v1787_v23, %v1792_v30  ;;  %v304_v36 = vsel %vm3223_vm13, %v1786_v26, %v1791_v31  ;;  %v1795_v37 = vpop.permute.xlu0 %1794  ;;  %v309_v39 = vsel %vm3223_vm13, %v1792_v30, %v1787_v23  ;;  %v308_v45 = vsel %vm3223_vm13, %v1791_v31, %v1786_v26  ;;  %1473 = vmatprep.subr.msk.bf16.mxu0 %vm2592_vm11, %v1472_v29 }
  0xe0   : > { %v1797_v42 = vunpack.i.h.bf16 %v1795_v37  ;;  %v1796_v43 = vunpack.i.l.bf16 %v1795_v37  ;;  %v1800_v44 = vpop.permute.xlu1 %1799  ;;  %v1478_v46 = vpack.c.bf16 %v305_v35, %v304_v36  ;;  %v1481_v57 = vpack.c.bf16 %v309_v39, %v308_v45 }
  0xe1   : > { %v1802_v48 = vunpack.i.h.bf16 %v1800_v44  ;;  %v1801_v49 = vunpack.i.l.bf16 %v1800_v44 }
  0xe2   : > { %1476 = vmatpush1.bf16.msk.msra.mxu0 %vm2619_vm14, %v1475_v38 }
  0xe3   : > { %v303_v52 = vsel %vm3223_vm13, %v1797_v42, %v1802_v48  ;;  %v302_v53 = vsel %vm3223_vm13, %v1796_v43, %v1801_v49  ;;  %v1805_v56 = vpop.permute.xlu0 %1804  ;;  %v307_v58 = vsel %vm3223_vm13, %v1802_v48, %v1797_v42  ;;  %v306_v62 = vsel %vm3223_vm13, %v1801_v49, %v1796_v43  ;;  %1479 = vmatprep.subr.msk.bf16.mxu0 %vm2638_vm15, %v1478_v46  ;;  %vm267_vm13 = vmand %vm2566_vm10, %vm2507_vm1 }
  0xe4   : > { %v1807_v59 = vunpack.i.h.bf16 %v1805_v56  ;;  %v1806_v60 = vunpack.i.l.bf16 %v1805_v56  ;;  %v1810_v61 = vpop.permute.xlu1 %1809  ;;  %v1484_v63 = vpack.c.bf16 %v303_v52, %v302_v53  ;;  %v1487_v18 = vpack.c.bf16 %v307_v58, %v306_v62  ;;  %vm2705_vm3 = vmpackc.low %vm267_vm13, %vm267_vm13 }
  0xe5   : > { %v1812_v3 = vunpack.i.h.bf16 %v1810_v61  ;;  %v1811_v7 = vunpack.i.l.bf16 %v1810_v61  ;;  %v3276_v46 = vmov 0  ;;  %vm2736_vm13 = vcmp.lt.s32.totalorder %v222_v34, 15 }
  0xe6   : > { %1482 = vmatpush1.bf16.msk.msra.mxu0 %vm2658_vm12, %v1481_v57  ;;  %v3277_v46 = vsel %vm2705_vm3, 4294967295, %v3276_v46 }
  0xe7   : > { %v262_v11 = vsel %vm3225_vm8, %v1807_v59, %v1812_v3  ;;  %v261_v13 = vsel %vm3225_vm8, %v1806_v60, %v1811_v7  ;;  %v1815_v17 = vpop.permute.xlu0 %1814  ;;  %v266_v19 = vsel %vm3225_vm8, %v1812_v3, %v1807_v59  ;;  %v265_v41 = vsel %vm3225_vm8, %v1811_v7, %v1806_v60  ;;  %1485 = vmatprep.subr.msk.bf16.mxu0 %vm2638_vm15, %v1484_v63 }
  0xe8   : > { %v1817_v20 = vunpack.i.h.bf16 %v1815_v17  ;;  %v1816_v21 = vunpack.i.l.bf16 %v1815_v17  ;;  %v1820_v22 = vpop.permute.xlu1 %1819  ;;  %v1490_v23 = vpack.c.bf16 %v262_v11, %v261_v13  ;;  %v1493_v35 = vpack.c.bf16 %v266_v19, %v265_v41 }
  0xe9   : > { %v1822_v26 = vunpack.i.h.bf16 %v1820_v22  ;;  %v1821_v27 = vunpack.i.l.bf16 %v1820_v22 }
  0xea   : > { %1488 = vmatpush1.bf16.msk.msra.mxu0 %vm2658_vm12, %v1487_v18 }
  0xeb   : > { %v260_v29 = vsel %vm3225_vm8, %v1817_v20, %v1822_v26  ;;  %v259_v30 = vsel %vm3225_vm8, %v1816_v21, %v1821_v27  ;;  %v1825_v31 = vpop.permute.xlu0 %1824  ;;  %v264_v36 = vsel %vm3225_vm8, %v1822_v26, %v1817_v20  ;;  %v263_v42 = vsel %vm3225_vm8, %v1821_v27, %v1816_v21  ;;  %1491 = vmatprep.subr.msk.bf16.mxu0 %vm2678_vm5, %v1490_v23 }
  0xec   : > { %v1827_v37 = vunpack.i.h.bf16 %v1825_v31  ;;  %v1826_v38 = vunpack.i.l.bf16 %v1825_v31  ;;  %v1830_v39 = vpop.permute.xlu1 %1829  ;;  %v1496_v43 = vpack.c.bf16 %v260_v29, %v259_v30  ;;  %vm2715_vm8 = vcmp.lt.s32.totalorder %v223_v25, 15 }
  0xed   : > { %v1832_v44 = vunpack.i.h.bf16 %v1830_v39  ;;  %v1831_v45 = vunpack.i.l.bf16 %v1830_v39  ;;  %v1499_v55 = vpack.c.bf16 %v264_v36, %v263_v42  ;;  %vm2730_vm10 = vmpackc.low %vm2715_vm8, %vm2715_vm8 }
  0xee   : > { %1494 = vmatpush1.bf16.msk.msra.mxu0 %vm2705_vm3, %v1493_v35 }
  0xef   : > { %v522_v48 = vsel %vm3230_vm0, %v1832_v44, %v1827_v37  ;;  %v521_v49 = vsel %vm3230_vm0, %v1831_v45, %v1826_v38  ;;  %v1835_v52 = vpop.permute.xlu0 %1834  ;;  %v518_v56 = vsel %vm3230_vm0, %v1827_v37, %v1832_v44  ;;  %v517_v60 = vsel %vm3230_vm0, %v1826_v38, %v1831_v45  ;;  %1497 = vmatprep.subr.msk.bf16.mxu0 %vm2678_vm5, %v1496_v43  ;;  %vm2756_vm5 = vmpackc.low %vm2736_vm13, %vm2736_vm13 }
  0xf0   : > { %v1837_v57 = vunpack.i.h.bf16 %v1835_v52  ;;  %v1836_v58 = vunpack.i.l.bf16 %v1835_v52  ;;  %v1840_v59 = vpop.permute.xlu1 %1839  ;;  %v1502_v61 = vpack.c.bf16 %v522_v48, %v521_v49  ;;  %v1505_v13 = vpack.c.bf16 %v518_v56, %v517_v60 }
  0xf1   : > { %v1842_v62 = vunpack.i.h.bf16 %v1840_v59  ;;  %v1841_v16 = vunpack.i.l.bf16 %v1840_v59 }
  0xf2   : > { %1500 = vmatpush1.bf16.msk.msra.mxu0 %vm2705_vm3, %v1499_v55  ;;  %vm481_vm3 = vmand %vm2715_vm8, %vm2512_vm2 }
  0xf3   : > { %v520_v3 = vsel %vm3230_vm0, %v1842_v62, %v1837_v57  ;;  %v519_v7 = vsel %vm3230_vm0, %v1841_v16, %v1836_v58  ;;  %v1845_v11 = vpop.permute.xlu0 %1844  ;;  %v516_v17 = vsel %vm3230_vm0, %v1837_v57, %v1842_v62  ;;  %v515_v20 = vsel %vm3230_vm0, %v1836_v58, %v1841_v16  ;;  %1503 = vmatprep.subr.msk.bf16.mxu0 %vm2730_vm10, %v1502_v61 }
  0xf4   : > { %v1847_v34 = vunpack.i.h.bf16 %v1845_v11  ;;  %v1846_v18 = vunpack.i.l.bf16 %v1845_v11  ;;  %v1850_v19 = vpop.permute.xlu1 %1849  ;;  %v1508_v21 = vpack.c.bf16 %v520_v3, %v519_v7  ;;  %vm3286_vm0 = vcmp.lt.s32.totalorder %v2499_v15, 113 }
  0xf5   : > { %v1852_v22 = vunpack.i.h.bf16 %v1850_v19  ;;  %v1851_v41 = vunpack.i.l.bf16 %v1850_v19  ;;  %vm3287_vm12 = vmmov %vm3286_vm0  ;;  %v1511_v30 = vpack.c.bf16 %v516_v17, %v515_v20 }
  0xf6   : > { %vm3288_vm15 = vmmov %vm3286_vm0  ;;  %1506 = vmatpush2.bf16.msk.msra.mxu0 %vm2756_vm5, %v1505_v13 }
  0xf7   : > { %v479_v26 = vsel %vm3286_vm0, %v1852_v22, %v1847_v34  ;;  %v478_v27 = vsel %vm3287_vm12, %v1851_v41, %v1846_v18  ;;  %v1855_v29 = vpop.permute.xlu0 %1854  ;;  %v475_v31 = vsel %vm3288_vm15, %v1847_v34, %v1852_v22  ;;  %vm3289_vm14 = vmmov %vm3286_vm0  ;;  %1509 = vmatprep.subr.msk.bf16.mxu0 %vm2730_vm10, %v1508_v21 }
  0xf8   : > { %v1857_v35 = vunpack.i.h.bf16 %v1855_v29  ;;  %v1856_v36 = vunpack.i.l.bf16 %v1855_v29  ;;  %v1860_v33 = vpop.permute.xlu1 %1859  ;;  %v474_v37 = vsel %vm3289_vm14, %v1846_v18, %v1851_v41  ;;  %v1514_v38 = vpack.c.bf16 %v479_v26, %v478_v27  ;;  %vm2776_vm0 = vmpackc.low %vm481_vm3, %vm481_vm3 }
  0xf9   : > { %v1862_v39 = vunpack.i.h.bf16 %v1860_v33  ;;  %v1861_v42 = vunpack.i.l.bf16 %v1860_v33  ;;  %vm3292_vm15 = vmmov %vm3287_vm12  ;;  %v1517_v49 = vpack.c.bf16 %v475_v31, %v474_v37 }
  0xfa   : > { %vm3293_vm14 = vmmov %vm3287_vm12  ;;  %vm3237_vm12 = vcmp.lt.s32.totalorder %v2499_v15, 127  ;;  %1512 = vmatpush2.bf16.msk.msra.mxu0 %vm2756_vm5, %v1511_v30 }
  0xfb   : > { %v477_v44 = vsel %vm3292_vm15, %v1862_v39, %v1857_v35  ;;  %v476_v45 = vsel %vm3293_vm14, %v1861_v42, %v1856_v36  ;;  %v1865_v48 = vpop.permute.xlu0 %1864  ;;  %vm3294_vm3 = vmmov %vm3293_vm14  ;;  %1515 = vmatprep.subr.msk.bf16.mxu0 %vm2776_vm0, %v1514_v38 }
  0xfc   : > { %v473_v52 = vsel %vm3294_vm3, %v1857_v35, %v1862_v39  ;;  %v1867_v55 = vunpack.i.h.bf16 %v1865_v48  ;;  %v1866_v56 = vunpack.i.l.bf16 %v1865_v48  ;;  %v1870_v57 = vpop.permute.xlu1 %1869  ;;  %vm3295_vm2 = vmmov %vm3294_vm3  ;;  %v1520_v59 = vpack.c.bf16 %v477_v44, %v476_v45 }
  0xfd   : > { %v472_v58 = vsel %vm3295_vm2, %v1856_v36, %v1861_v42  ;;  %v1872_v60 = vunpack.i.h.bf16 %v1870_v57  ;;  %v1871_v61 = vunpack.i.l.bf16 %v1870_v57  ;;  %vm3296_vm15 = vmand %vm2736_vm13, %vm2507_vm1  ;;  %vm555_vm3 = vcmp.lt.s32.totalorder %v2499_v15, 111 }
  0xfe   : > { %vm2803_vm14 = vmpackc.low %vm3296_vm15, %vm3296_vm15  ;;  %v1523_v11 = vpack.c.bf16 %v473_v52, %v472_v58 }
  0xff   : > { %v438_v16 = vsel %vm3237_vm12, %v1872_v60, %v1867_v55  ;;  %v437_v3 = vsel %vm3237_vm12, %v1871_v61, %v1866_v56  ;;  %v1875_v7 = vpop.permute.xlu0 %1874  ;;  %v434_v13 = vsel %vm3237_vm12, %v1867_v55, %v1872_v60  ;;  %1518 = vmatpush2.bf16.msk.msra.mxu0 %vm2803_vm14, %v1517_v49  ;;  %v433_v18 = vsel %vm3237_vm12, %v1866_v56, %v1871_v61  ;;  %vm2822_vm1 = vmpackc.low %vm2526_vm4, %vm2526_vm4 }
 0x100   : > { %v1877_v24 = vunpack.i.h.bf16 %v1875_v7  ;;  %v1876_v17 = vunpack.i.l.bf16 %v1875_v7  ;;  %v1880_v34 = vpop.permute.xlu1 %1879  ;;  %v1526_v19 = vpack.c.bf16 %v438_v16, %v437_v3  ;;  %1521 = vmatprep.subr.msk.bf16.mxu0 %vm2776_vm0, %v1520_v59  ;;  %vm2837_vm2 = vmpackc.low %vm2560_vm9, %vm2560_vm9  ;;  %v1529_v35 = vpack.c.bf16 %v434_v13, %v433_v18 }
 0x101   : > { %v1882_v20 = vunpack.i.h.bf16 %v1880_v34  ;;  %v1881_v21 = vunpack.i.l.bf16 %v1880_v34  ;;  %vm565_vm15 = vmand %vm2715_vm8, %vm2526_vm4  ;;  %v413_v61 = vpack.c.bf16 %v2452_v6, %v2449_v5  ;;  %v412_v6 = vpack.c.bf16 %v2438_v1, %v2435_v0  ;;  %v2064_v0 = vld [vmem:[#allocation5] ss:$12 sps:$4 sm:$0xff]   ;;  %v2068_v1 = vld [vmem:[#allocation5 + $0x1c] ss:$12 sps:$4 sm:$0xff]  }
 0x102   : > { %vm2858_vm4 = vmpackc.low %vm565_vm15, %vm565_vm15  ;;  %vm3238_vm8 = vcmask 261120   ;;  %v410_v34 = vpack.c.bf16 %v2446_v4, %v2441_v2 }
 0x103   : > { %v432_v41 = vsel %vm3237_vm12, %v1877_v24, %v1882_v20  ;;  %v436_v26 = vsel %vm3237_vm12, %v1882_v20, %v1877_v24  ;;  %v431_v27 = vsel %vm3237_vm12, %v1876_v17, %v1881_v21  ;;  %v435_v29 = vsel %vm3237_vm12, %v1881_v21, %v1876_v17  ;;  %v1885_v30 = vpop.permute.xlu0 %1884  ;;  %1524 = vmatpush2.bf16.msk.msra.mxu0 %vm2803_vm14, %v1523_v11  ;;  %vm564_vm12 = vmand %vm2736_vm13, %vm2560_vm9  ;;  %v2063_v17 = vld [vmem:[#allocation5 + $0x8] ss:$12 sps:$4 sm:$0xff]  }
 0x104   : > { %v1887_v36 = vunpack.i.h.bf16 %v1885_v30  ;;  %v1886_v33 = vunpack.i.l.bf16 %v1885_v30  ;;  %v1890_v37 = vpop.permute.xlu1 %1889  ;;  %v1532_v38 = vpack.c.bf16 %v436_v26, %v435_v29  ;;  %1527 = vmatprep.subr.msk.bf16.mxu0 %vm2822_vm1, %v1526_v19  ;;  %v1535_v44 = vpack.c.bf16 %v432_v41, %v431_v27  ;;  %vm2868_vm9 = vmpackc.low %vm564_vm12, %vm564_vm12 }
 0x105   : > { %v1892_v39 = vunpack.i.h.bf16 %v1890_v37  ;;  %v1891_v42 = vunpack.i.l.bf16 %v1890_v37  ;;  %v411_v24 = vpack.c.bf16 %v2460_v9, %v2457_v8  ;;  %v2067_v8 = vld [vmem:[#allocation5 + $0x20] ss:$12 sps:$4 sm:$0xff]   ;;  %v2070_v9 = vld [vmem:[#allocation5 + $0x18] ss:$12 sps:$4 sm:$0xff]   ;;  %vm3307_vm13 = vcmp.lt.s32.totalorder %v2499_v15, 1 }
 0x106   : > { %vm3308_vm12 = vmmov %vm3307_vm13 }
 0x107   : > { %v1895_v45 = vpop.permute.xlu0 %1894  ;;  %v562_v48 = vsel %vm555_vm3, %v1891_v42, %v1886_v33  ;;  %v563_v40 = vsel %vm555_vm3, %v1892_v39, %v1887_v36  ;;  %v558_v49 = vsel %vm555_vm3, %v1886_v33, %v1891_v42  ;;  %v559_v54 = vsel %vm555_vm3, %v1887_v36, %v1892_v39  ;;  %1530 = vmatpush2.bf16.msk.msra.mxu0 %vm2837_vm2, %v1529_v35  ;;  %vm3309_vm15 = vmmov %vm3308_vm12 }
 0x108   : > { %v1897_v63 = vunpack.i.h.bf16 %v1895_v45  ;;  %v1896_v52 = vunpack.i.l.bf16 %v1895_v45  ;;  %v1900_v55 = vpop.permute.xlu1 %1899  ;;  %v1538_v56 = vpack.c.bf16 %v563_v40, %v562_v48  ;;  %v1541_v58 = vpack.c.bf16 %v559_v54, %v558_v49  ;;  %1533 = vmatprep.subr.msk.bf16.mxu0 %vm2822_vm1, %v1532_v38 }
 0x109   : > { %v1902_v59 = vunpack.i.h.bf16 %v1900_v55  ;;  %v1901_v60 = vunpack.i.l.bf16 %v1900_v55 }
 0x10a   : > { %1539 = vmatprep.subr.msk.bf16.mxu1 %vm2858_vm4, %v1538_v56 }
 0x10b   : > { %v557_v16 = vsel %vm555_vm3, %v1897_v63, %v1902_v59  ;;  %v561_v3 = vsel %vm555_vm3, %v1902_v59, %v1897_v63  ;;  %v556_v7 = vsel %vm555_vm3, %v1896_v52, %v1901_v60  ;;  %v560_v11 = vsel %vm555_vm3, %v1901_v60, %v1896_v52  ;;  %1542 = vmatpush1.bf16.msk.msra.mxu1 %vm2868_vm9, %v1541_v58 }
 0x10c   : > { %v1544_v13 = vpack.c.bf16 %v561_v3, %v560_v11  ;;  %v1547_v5 = vpack.c.bf16 %v557_v16, %v556_v7  ;;  %1536 = vmatpush2.bf16.msk.msra.mxu0 %vm2837_vm2, %v1535_v44 }
 0x10d   : > { %655 = vmatprep.subr.bf16.mxu0 %v413_v61 }
 0x10e   : > { %1545 = vmatprep.subr.msk.bf16.mxu1 %vm2858_vm4, %v1544_v13 }
 0x10f   : > { %1548 = vmatpush1.bf16.msk.msra.mxu1 %vm2868_vm9, %v1547_v5 }
 0x110   : > { %656 = vmatpush2.bf16.msra.mxu0 %v412_v6 }
 0x111   : > { %657 = vmatprep.subr.bf16.mxu0 %v411_v24 }
 0x112   : > { %1549 = vmatmul.mubr.msk.bf16.vlgmr.msra.gmra.mxu1 %vm3238_vm8, %v2063_v17 }
 0x113   : > { %722 = vmatprep.mubr.bf16.mxu1 %v2268_v12 }
 0x114   : > { %658 = vmatpush2.bf16.msra.mxu0 %v410_v34 }
 0x117   : > { %660 = vmatmul.mubr.bf16.vlgmr.msra.gmra.mxu0 %v2064_v0 }
 0x118   : > { %669 = vmatprep.mubr.bf16.mxu0 %v2068_v1 }
 0x11a   : > { %1550 = vmatmul.mubr.msk.bf16.gmra.mxu1 %vm3238_vm8, %v2067_v8  ;;  %vm3310_vm8 = vmmov %vm3308_vm12 }
 0x11f   : > { %670 = vmatmul.mubr.bf16.gmra.mxu0 %v2070_v9 }
 0x120   : > { %1227 = vmatprep.mubr.bf16.mxu0 %v2268_v12 }
 0x1d2   : > { %v714_v18 = vpop.f32.mrf.mxu1 }
 0x1d4   : > { %v716_v19 = vpop.f32.mrf.mxu1 }
 0x1d6   : > { %v718_v2 = vpop.f32.mrf.mxu1 }
 0x1d7   : > { %v661_v4 = vpop.f32.mrf.mxu0 }
 0x1d8   : > { %v720_v20 = vpop.f32.mrf.mxu1  ;;  %v715_v48 = vadd.f32 %v714_v18, %v661_v4 }
 0x1d9   : > { %v663_v21 = vpop.f32.mrf.mxu0 }
 0x1da   : > { %v724_v41 = vpop.f32.mrf.mxu1  ;;  %v717_v39 = vadd.f32 %v716_v19, %v663_v21 }
 0x1db   : > { %v665_v26 = vpop.f32.mrf.mxu0 }
 0x1dc   : > { %v726_v29 = vpop.f32.mrf.mxu1  ;;  %v733_v63 = vadd.f32 %v717_v39, %v715_v48  ;;  %v719_v55 = vadd.f32 %v718_v2, %v665_v26 }
 0x1dd   : > { %v667_v27 = vpop.f32.mrf.mxu0 }
 0x1de   : > { %v728_v35 = vpop.f32.mrf.mxu1  ;;  %v721_v54 = vadd.f32 %v720_v20, %v667_v27 }
 0x1df   : > { %v671_v30 = vpop.f32.mrf.mxu0 }
 0x1e0   : > { %v725_v33 = vadd.f32 %v724_v41, %v671_v30  ;;  %v730_v44 = vpop.f32.mrf.mxu1  ;;  %v736_v56 = vadd.f32 %v721_v54, %v719_v55 }
 0x1e1   : > { %v673_v36 = vpop.f32.mrf.mxu0 }
 0x1e2   : > { %v727_v37 = vadd.f32 %v726_v29, %v673_v36 }
 0x1e3   : > { %v675_v38 = vpop.f32.mrf.mxu0 }
 0x1e4   : > { %v739_v42 = vadd.f32 %v727_v37, %v725_v33  ;;  %v729_v40 = vadd.f32 %v728_v35, %v675_v38 }
 0x1e5   : > { %v677_v45 = vpop.f32.mrf.mxu0 }
 0x1e6   : > { %v731_v49 = vadd.f32 %v730_v44, %v677_v45  ;;  %740 = vadd.xlane.f32.xlu0 %v739_v42 }
 0x1e8   : > { %v742_v52 = vadd.f32 %v731_v49, %v729_v40 }
 0x1ea   : > { %734 = vadd.xlane.f32.xlu0 %v733_v63  ;;  %743 = vadd.xlane.f32.xlu1 %v742_v52 }
 0x1ee   : > { %737 = vadd.xlane.f32.xlu0 %v736_v56 }
 0x26f   : > { %v741_v58 = vpop.xlane.xlu0 %740 }
 0x270   : > { %v748_v59 = vmul.f32 0.00390625, %v741_v58 }
 0x272   : > { %v754_v60 = vsub.f32 %v725_v33, %v748_v59  ;;  %v755_v61 = vsub.f32 %v727_v37, %v748_v59 }
 0x273   : > { %v735_v16 = vpop.xlane.xlu0 %734  ;;  %v744_v3 = vpop.xlane.xlu1 %743 }
 0x274   : > { %v746_v7 = vmul.f32 0.00390625, %v735_v16  ;;  %v749_v11 = vmul.f32 0.00390625, %v744_v3  ;;  %v762_v13 = vmul.f32 %v754_v60, %v754_v60  ;;  %v763_v5 = vmul.f32 %v755_v61, %v755_v61 }
 0x276   : > { %v750_v6 = vsub.f32 %v715_v48, %v746_v7  ;;  %v751_v24 = vsub.f32 %v717_v39, %v746_v7  ;;  %v756_v17 = vsub.f32 %v729_v40, %v749_v11  ;;  %v757_v34 = vsub.f32 %v731_v49, %v749_v11 }
 0x277   : > { %v738_v0 = vpop.xlane.xlu0 %737  ;;  %v772_v1 = vadd.f32 %v763_v5, %v762_v13 }
 0x278   : > { %v747_v8 = vmul.f32 0.00390625, %v738_v0  ;;  %v758_v9 = vmul.f32 %v750_v6, %v750_v6  ;;  %v759_v18 = vmul.f32 %v751_v24, %v751_v24  ;;  %v764_v19 = vmul.f32 %v756_v17, %v756_v17 }
 0x279   : > { %773 = vadd.xlane.f32.xlu1 %v772_v1  ;;  %v765_v2 = vmul.f32 %v757_v34, %v757_v34 }
 0x27a   : > { %v752_v4 = vsub.f32 %v719_v55, %v747_v8  ;;  %v753_v20 = vsub.f32 %v721_v54, %v747_v8  ;;  %v766_v21 = vadd.f32 %v759_v18, %v758_v9 }
 0x27b   : > { %v775_v41 = vadd.f32 %v765_v2, %v764_v19 }
 0x27c   : > { %v760_v26 = vmul.f32 %v752_v4, %v752_v4  ;;  %v761_v27 = vmul.f32 %v753_v20, %v753_v20 }
 0x27d   : > { %767 = vadd.xlane.f32.xlu1 %v766_v21  ;;  %776 = vadd.xlane.f32.xlu0 %v775_v41 }
 0x27e   : > { %v769_v29 = vadd.f32 %v761_v27, %v760_v26 }
 0x281   : > { %770 = vadd.xlane.f32.xlu0 %v769_v29 }
 0x302   : > { %v774_v30 = vpop.xlane.xlu1 %773 }
 0x303   : > { %v780_v35 = vmul.f32 0.00390625, %v774_v30 }
 0x305   : > { %v784_v36 = vadd.f32 1e-05, %v780_v35 }
 0x306   : > { %v777_v33 = vpop.xlane.xlu0 %776  ;;  %v768_v37 = vpop.xlane.xlu1 %767 }
 0x307   : > { %2079 = vrsqrt.f32 %v784_v36  ;;  %v781_v38 = vmul.f32 0.00390625, %v777_v33  ;;  %v778_v39 = vmul.f32 0.00390625, %v768_v37 }
 0x309   : > { %v785_v42 = vadd.f32 1e-05, %v781_v38  ;;  %v782_v44 = vadd.f32 1e-05, %v778_v39 }
 0x30a   : > { %v771_v45 = vpop.xlane.xlu0 %770 }
 0x30b   : > { %2081 = vrsqrt.f32 %v785_v42  ;;  %v779_v48 = vmul.f32 0.00390625, %v771_v45 }
 0x30c   : > { %2083 = vrsqrt.f32 %v782_v44 }
 0x30d   : > { %v783_v40 = vadd.f32 1e-05, %v779_v48 }
 0x30f   : > { %2085 = vrsqrt.f32 %v783_v40 }
 0x314   : > { %v2080_v49 = vpop.eup %2079 }
 0x315   : > { %v794_v54 = vmul.f32 %v2080_v49, %v754_v60  ;;  %v795_v63 = vmul.f32 %v2080_v49, %v755_v61 }
 0x317   : > { %v802_v59 = vmax.f32 %v794_v54, 0.0  ;;  %v803_v16 = vmax.f32 %v795_v63, 0.0 }
 0x318   : > { %v2082_v52 = vpop.eup %2081 }
 0x319   : > { %v2084_v55 = vpop.eup %2083  ;;  %v796_v56 = vmul.f32 %v2082_v52, %v756_v17  ;;  %v797_v58 = vmul.f32 %v2082_v52, %v757_v34 }
 0x31a   : > { %v790_v11 = vmul.f32 %v2084_v55, %v750_v6  ;;  %v791_v9 = vmul.f32 %v2084_v55, %v751_v24 }
 0x31b   : > { %v804_v3 = vmax.f32 %v796_v56, 0.0  ;;  %v805_v7 = vmax.f32 %v797_v58, 0.0 }
 0x31c   : > { %v2086_v13 = vpop.eup %2085  ;;  %v798_v18 = vmax.f32 %v790_v11, 0.0  ;;  %v799_v17 = vmax.f32 %v791_v9, 0.0 }
 0x31d   : > { %v792_v5 = vmul.f32 %v2086_v13, %v752_v4  ;;  %v793_v0 = vmul.f32 %v2086_v13, %v753_v20  ;;  %v1908_v1 = vpack.i.bf16 %v805_v7, %v803_v16  ;;  %v1903_v8 = vpack.i.bf16 %v804_v3, %v802_v59  ;;  %v2073_v20 = vld [vmem:[#allocation7 + $0x4] ss:$12 sps:$4 sm:$0xff]  }
 0x31e   : > { %v2908_v34 = vpack.c.bf16 %v805_v7, %v803_v16  ;;  %v2910_v2 = vpack.c.bf16 %v804_v3, %v802_v59  ;;  %1174 = vmatprep.mubr.bf16.mxu1 %v2073_v20 }
 0x31f   : > { %v800_v19 = vmax.f32 %v792_v5, 0.0  ;;  %1909 = vrot.lane.b32.xlu0 %v1908_v1, %s2260_s18  ;;  %1904 = vrot.lane.b32.xlu1 %v1903_v8, %s2260_s18  ;;  %v801_v60 = vmax.f32 %v793_v0, 0.0 }
 0x321   : > { %v1913_v61 = vpack.i.bf16 %v800_v19, %v798_v18  ;;  %v1918_v6 = vpack.i.bf16 %v801_v60, %v799_v17  ;;  %v2912_v4 = vpack.c.bf16 %v801_v60, %v799_v17  ;;  %v2916_v24 = vpack.c.bf16 %v800_v19, %v798_v18 }
 0x323   : > { %1924 = vrot.lane.b32.xlu0 %v1903_v8, %s2261_s20  ;;  %1914 = vrot.lane.b32.xlu1 %v1913_v61, %s2260_s18 }
 0x327   : > { %1929 = vrot.lane.b32.xlu0 %v1913_v61, %s2261_s20  ;;  %1919 = vrot.lane.b32.xlu1 %v1918_v6, %s2260_s18  ;;  %s2187_s18 = sshll.u32 %s2269_s5, 4  ;;  %s2188_s18 = int_to_ptr.vmem [resolvable:$false] %s2187_s18 }
 0x328   : > { %p2190_p6 = scmp.lt.s32.totalorder %s3168_s22, %s2188_s18 }
 0x32b   : > { %1944 = vrot.lane.b32.xlu0 %v1903_v8, %s2262_s25  ;;  %1934 = vrot.lane.b32.xlu1 %v1908_v1, %s2261_s20 }
 0x32f   : > { %1949 = vrot.lane.b32.xlu0 %v1913_v61, %s2262_s25  ;;  %1939 = vrot.lane.b32.xlu1 %v1918_v6, %s2261_s20  ;;  %s2189_s20 = scalar_lea.vmem %s2188_s18, 2048 }
 0x330   : > { %p2191_p12 = scmp.lt.s32.totalorder %s2189_s20, %s2183_s4 }
 0x332   : > { %p2192_p7 = por %p2191_p12, %p2190_p6 }
 0x333   : > { %1964 = vrot.lane.b32.xlu0 %v1903_v8, %s2263_s27  ;;  %1954 = vrot.lane.b32.xlu1 %v1908_v1, %s2262_s25 }
 0x334   : > { %p2193_p9 = pnand %p2192_p7, %p2186_p2 }
 0x337   : > { %1969 = vrot.lane.b32.xlu0 %v1913_v61, %s2263_s27  ;;  %1959 = vrot.lane.b32.xlu1 %v1918_v6, %s2262_s25 }
 0x33b   : > { %1984 = vrot.lane.b32.xlu0 %v1903_v8, %s2264_s28  ;;  %1974 = vrot.lane.b32.xlu1 %v1908_v1, %s2263_s27 }
 0x33f   : > { %1989 = vrot.lane.b32.xlu0 %v1913_v61, %s2264_s28  ;;  %1979 = vrot.lane.b32.xlu1 %v1918_v6, %s2263_s27 }
 0x343   : > { %2004 = vrot.lane.b32.xlu0 %v1903_v8, %s2265_s29  ;;  %1994 = vrot.lane.b32.xlu1 %v1908_v1, %s2264_s28 }
 0x347   : > { %2009 = vrot.lane.b32.xlu0 %v1913_v61, %s2265_s29  ;;  %1999 = vrot.lane.b32.xlu1 %v1918_v6, %s2264_s28 }
 0x34b   : > { %2024 = vrot.lane.b32.xlu0 %v1903_v8, %s2266_s8  ;;  %2014 = vrot.lane.b32.xlu1 %v1908_v1, %s2265_s29 }
 0x34f   : > { %2029 = vrot.lane.b32.xlu0 %v1913_v61, %s2266_s8  ;;  %2019 = vrot.lane.b32.xlu1 %v1918_v6, %s2265_s29 }
 0x353   : > { %2044 = vrot.lane.b32.xlu0 %v1903_v8, %s2267_s9  ;;  %2034 = vrot.lane.b32.xlu1 %v1908_v1, %s2266_s8 }
 0x357   : > { %2049 = vrot.lane.b32.xlu0 %v1913_v61, %s2267_s9  ;;  %2039 = vrot.lane.b32.xlu1 %v1918_v6, %s2266_s8 }
 0x35b   : > { %2054 = vrot.lane.b32.xlu1 %v1908_v1, %s2267_s9 }
 0x35f   : > { %2059 = vrot.lane.b32.xlu1 %v1918_v6, %s2267_s9 }
 0x391   : > { %v1910_v21 = vpop.permute.xlu0 %1909  ;;  %v1905_v41 = vpop.permute.xlu1 %1904 }
 0x392   : > { %v1912_v26 = vunpack.i.h.bf16 %v1910_v21  ;;  %v1911_v27 = vunpack.i.l.bf16 %v1910_v21  ;;  %v1907_v29 = vunpack.i.h.bf16 %v1905_v41  ;;  %v1906_v30 = vunpack.i.l.bf16 %v1905_v41 }
 0x394   : > { %v933_v35 = vsel %vm3307_vm13, %v1907_v29, %v1912_v26  ;;  %v937_v36 = vsel %vm3308_vm12, %v1912_v26, %v1907_v29  ;;  %v932_v33 = vsel %vm3309_vm15, %v1906_v30, %v1911_v27  ;;  %v936_v37 = vsel %vm3310_vm8, %v1911_v27, %v1906_v30  ;;  %vm3311_vm13 = vmmov %vm3310_vm8 }
 0x395   : > { %v1558_v38 = vpack.c.bf16 %v933_v35, %v932_v33  ;;  %v1561_v39 = vpack.c.bf16 %v937_v36, %v936_v37  ;;  %v1925_v42 = vpop.permute.xlu0 %1924  ;;  %v1915_v44 = vpop.permute.xlu1 %1914  ;;  %vm3312_vm12 = vmmov %vm3310_vm8 }
 0x396   : > { %v1917_v40 = vunpack.i.h.bf16 %v1915_v44  ;;  %v1916_v49 = vunpack.i.l.bf16 %v1915_v44  ;;  %vm3313_vm15 = vmmov %vm3310_vm8  ;;  %v1927_v11 = vunpack.i.h.bf16 %v1925_v42  ;;  %v1926_v13 = vunpack.i.l.bf16 %v1925_v42 }
 0x397   : > { %1559 = vmatprep.subr.msk.bf16.mxu1 %vm2543_vm6, %v1558_v38 }
 0x398   : > { %1562 = vmatpush1.bf16.msk.msra.mxu1 %vm2550_vm7, %v1561_v39 }
 0x399   : > { %v1930_v45 = vpop.permute.xlu0 %1929  ;;  %v1920_v48 = vpop.permute.xlu1 %1919 }
 0x39a   : > { %v1922_v54 = vunpack.i.h.bf16 %v1920_v48  ;;  %v1921_v63 = vunpack.i.l.bf16 %v1920_v48  ;;  %v1932_v17 = vunpack.i.h.bf16 %v1930_v45  ;;  %v1931_v6 = vunpack.i.l.bf16 %v1930_v45 }
 0x39c   : > { %v930_v52 = vsel %vm3311_vm13, %v1916_v49, %v1921_v63  ;;  %v931_v55 = vsel %vm3310_vm8, %v1917_v40, %v1922_v54  ;;  %v934_v56 = vsel %vm3312_vm12, %v1921_v63, %v1916_v49  ;;  %v935_v58 = vsel %vm3313_vm15, %v1922_v54, %v1917_v40 }
 0x39d   : > { %v1564_v59 = vpack.c.bf16 %v931_v55, %v930_v52  ;;  %v1567_v16 = vpack.c.bf16 %v935_v58, %v934_v56  ;;  %v1945_v3 = vpop.permute.xlu0 %1944  ;;  %v1935_v7 = vpop.permute.xlu1 %1934  ;;  %vm3314_vm13 = vcmp.lt.s32.totalorder %v2499_v15, 15 }
 0x39e   : > { %v1937_v5 = vunpack.i.h.bf16 %v1935_v7  ;;  %v1936_v0 = vunpack.i.l.bf16 %v1935_v7  ;;  %vm3315_vm8 = vmmov %vm3314_vm13  ;;  %v1947_v33 = vunpack.i.h.bf16 %v1945_v3  ;;  %v1946_v37 = vunpack.i.l.bf16 %v1945_v3 }
 0x39f   : > { %1565 = vmatprep.subr.msk.bf16.mxu1 %vm2543_vm6, %v1564_v59  ;;  %vm3316_vm12 = vmmov %vm3315_vm8 }
 0x3a0   : > { %v897_v1 = vsel %vm3314_vm13, %v1927_v11, %v1937_v5  ;;  %v901_v8 = vsel %vm3315_vm8, %v1937_v5, %v1927_v11  ;;  %v896_v9 = vsel %vm3316_vm12, %v1926_v13, %v1936_v0  ;;  %vm3317_vm15 = vmmov %vm3315_vm8  ;;  %1568 = vmatpush1.bf16.msk.msra.mxu1 %vm2550_vm7, %v1567_v16  ;;  %vm3322_vm12 = vnez %v3269_v32 }
 0x3a1   : > { %v900_v18 = vsel %vm3317_vm15, %v1936_v0, %v1926_v13  ;;  %v1570_v19 = vpack.c.bf16 %v897_v1, %v896_v9  ;;  %v1950_v61 = vpop.permute.xlu0 %1949  ;;  %v1940_v47 = vpop.permute.xlu1 %1939  ;;  %vm3318_vm6 = vmmov %vm3315_vm8  ;;  %vm3323_vm15 = vcmp.lt.s32.totalorder %v2499_v15, 16 }
 0x3a2   : > { %v1573_v60 = vpack.c.bf16 %v901_v8, %v900_v18  ;;  %v1942_v20 = vunpack.i.h.bf16 %v1940_v47  ;;  %v1941_v21 = vunpack.i.l.bf16 %v1940_v47  ;;  %vm3319_vm13 = vmmov %vm3318_vm6  ;;  %v1952_v63 = vunpack.i.h.bf16 %v1950_v61 }
 0x3a3   : > { %1571 = vmatprep.subr.msk.bf16.mxu1 %vm2592_vm11, %v1570_v19  ;;  %vm3320_vm8 = vmmov %vm3318_vm6  ;;  %v1951_v52 = vunpack.i.l.bf16 %v1950_v61 }
 0x3a4   : > { %v895_v41 = vsel %vm3318_vm6, %v1932_v17, %v1942_v20  ;;  %v899_v26 = vsel %vm3319_vm13, %v1942_v20, %v1932_v17  ;;  %v894_v51 = vsel %vm3320_vm8, %v1931_v6, %v1941_v21  ;;  %vm3321_vm7 = vmmov %vm3318_vm6  ;;  %1574 = vmatpush1.bf16.msk.msra.mxu1 %vm3322_vm12, %v1573_v60 }
 0x3a5   : > { %v898_v27 = vsel %vm3321_vm7, %v1941_v21, %v1931_v6  ;;  %v1576_v29 = vpack.c.bf16 %v895_v41, %v894_v51  ;;  %v1965_v35 = vpop.permute.xlu0 %1964  ;;  %v1955_v36 = vpop.permute.xlu1 %1954  ;;  %vm3324_vm6 = vmmov %vm3323_vm15 }
 0x3a6   : > { %v1579_v30 = vpack.c.bf16 %v899_v26, %v898_v27  ;;  %v1957_v38 = vunpack.i.h.bf16 %v1955_v36  ;;  %v1956_v39 = vunpack.i.l.bf16 %v1955_v36  ;;  %vm3325_vm13 = vmmov %vm3324_vm6  ;;  %v1967_v5 = vunpack.i.h.bf16 %v1965_v35 }
 0x3a7   : > { %1577 = vmatprep.subr.msk.bf16.mxu1 %vm2592_vm11, %v1576_v29  ;;  %vm3326_vm8 = vmmov %vm3324_vm6  ;;  %vm3327_vm11 = vnez %v3271_v50  ;;  %v1966_v0 = vunpack.i.l.bf16 %v1965_v35 }
 0x3a8   : > { %v861_v42 = vsel %vm3323_vm15, %v1947_v33, %v1957_v38  ;;  %v865_v44 = vsel %vm3324_vm6, %v1957_v38, %v1947_v33  ;;  %v860_v45 = vsel %vm3325_vm13, %v1946_v37, %v1956_v39  ;;  %v864_v48 = vsel %vm3326_vm8, %v1956_v39, %v1946_v37  ;;  %1580 = vmatpush1.bf16.msk.msra.mxu1 %vm3322_vm12, %v1579_v30  ;;  %vm3328_vm7 = vmmov %vm3324_vm6 }
 0x3a9   : > { %v1582_v40 = vpack.c.bf16 %v861_v42, %v860_v45  ;;  %v1585_v49 = vpack.c.bf16 %v865_v44, %v864_v48  ;;  %v1970_v54 = vpop.permute.xlu0 %1969  ;;  %v1960_v14 = vpop.permute.xlu1 %1959  ;;  %vm3329_vm15 = vmmov %vm3324_vm6  ;;  %vm3331_vm13 = vnez %v3273_v10  ;;  %vm3332_vm8 = vcmp.lt.s32.totalorder %v2499_v15, 17 }
 0x3aa   : > { %v1962_v55 = vunpack.i.h.bf16 %v1960_v14  ;;  %v1961_v56 = vunpack.i.l.bf16 %v1960_v14  ;;  %vm3330_vm12 = vmmov %vm3324_vm6  ;;  %v1972_v6 = vunpack.i.h.bf16 %v1970_v54  ;;  %v1971_v20 = vunpack.i.l.bf16 %v1970_v54 }
 0x3ab   : > { %1583 = vmatprep.subr.msk.bf16.mxu1 %vm3327_vm11, %v1582_v40 }
 0x3ac   : > { %v859_v58 = vsel %vm3328_vm7, %v1952_v63, %v1962_v55  ;;  %v863_v59 = vsel %vm3329_vm15, %v1962_v55, %v1952_v63  ;;  %v858_v32 = vsel %vm3324_vm6, %v1951_v52, %v1961_v56  ;;  %v862_v16 = vsel %vm3330_vm12, %v1961_v56, %v1951_v52  ;;  %1586 = vmatpush1.bf16.msk.msra.mxu1 %vm3331_vm13, %v1585_v49  ;;  %vm3333_vm7 = vmmov %vm3332_vm8 }
 0x3ad   : > { %v1588_v3 = vpack.c.bf16 %v859_v58, %v858_v32  ;;  %v1591_v7 = vpack.c.bf16 %v863_v59, %v862_v16  ;;  %v1985_v11 = vpop.permute.xlu0 %1984  ;;  %v1975_v13 = vpop.permute.xlu1 %1974  ;;  %vm3334_vm15 = vmmov %vm3333_vm7 }
 0x3ae   : > { %v1977_v1 = vunpack.i.h.bf16 %v1975_v13  ;;  %v1976_v8 = vunpack.i.l.bf16 %v1975_v13  ;;  %vm3335_vm6 = vmmov %vm3333_vm7  ;;  %v1987_v33 = vunpack.i.h.bf16 %v1985_v11  ;;  %v1986_v37 = vunpack.i.l.bf16 %v1985_v11 }
 0x3af   : > { %1589 = vmatprep.subr.msk.bf16.mxu1 %vm3327_vm11, %v1588_v3  ;;  %vm3336_vm11 = vnez %v3275_v28  ;;  %vm3337_vm12 = vmmov %vm3335_vm6 }
 0x3b0   : > { %v825_v9 = vsel %vm3332_vm8, %v1967_v5, %v1977_v1  ;;  %v829_v18 = vsel %vm3333_vm7, %v1977_v1, %v1967_v5  ;;  %v824_v19 = vsel %vm3334_vm15, %v1966_v0, %v1976_v8  ;;  %v828_v60 = vsel %vm3335_vm6, %v1976_v8, %v1966_v0  ;;  %1592 = vmatpush1.bf16.msk.msra.mxu1 %vm3331_vm13, %v1591_v7  ;;  %vm3338_vm8 = vmmov %vm3335_vm6 }
 0x3b1   : > { %v1594_v61 = vpack.c.bf16 %v825_v9, %v824_v19  ;;  %v1597_v47 = vpack.c.bf16 %v829_v18, %v828_v60  ;;  %v1990_v17 = vpop.permute.xlu0 %1989  ;;  %v1980_v50 = vpop.permute.xlu1 %1979  ;;  %vm3339_vm7 = vmmov %vm3335_vm6  ;;  %vm3341_vm15 = vnez %v3277_v46 }
 0x3b2   : > { %v1982_v21 = vunpack.i.h.bf16 %v1980_v50  ;;  %v1981_v41 = vunpack.i.l.bf16 %v1980_v50  ;;  %vm3340_vm13 = vmmov %vm3335_vm6  ;;  %vm3342_vm6 = vcmp.lt.s32.totalorder %v2499_v15, 112  ;;  %v1992_v14 = vunpack.i.h.bf16 %v1990_v17 }
 0x3b3   : > { %1595 = vmatprep.subr.msk.bf16.mxu1 %vm3336_vm11, %v1594_v61  ;;  %v1991_v63 = vunpack.i.l.bf16 %v1990_v17 }
 0x3b4   : > { %v823_v26 = vsel %vm3337_vm12, %v1972_v6, %v1982_v21  ;;  %v827_v51 = vsel %vm3338_vm8, %v1982_v21, %v1972_v6  ;;  %v822_v10 = vsel %vm3339_vm7, %v1971_v20, %v1981_v41  ;;  %v826_v27 = vsel %vm3340_vm13, %v1981_v41, %v1971_v20  ;;  %1598 = vmatpush1.bf16.msk.msra.mxu1 %vm3341_vm15, %v1597_v47  ;;  %vm3343_vm12 = vmmov %vm3342_vm6 }
 0x3b5   : > { %v1600_v29 = vpack.c.bf16 %v823_v26, %v822_v10  ;;  %v1603_v30 = vpack.c.bf16 %v827_v51, %v826_v27  ;;  %v2005_v35 = vpop.permute.xlu0 %2004  ;;  %v1995_v36 = vpop.permute.xlu1 %1994  ;;  %vm3344_vm8 = vmmov %vm3342_vm6 }
 0x3b6   : > { %v1997_v38 = vunpack.i.h.bf16 %v1995_v36  ;;  %v1996_v39 = vunpack.i.l.bf16 %v1995_v36  ;;  %vm3345_vm7 = vmmov %vm3342_vm6  ;;  %v2007_v11 = vunpack.i.h.bf16 %v2005_v35  ;;  %v2006_v13 = vunpack.i.l.bf16 %v2005_v35 }
 0x3b7   : > { %1601 = vmatprep.subr.msk.bf16.mxu1 %vm3336_vm11, %v1600_v29  ;;  %vm3346_vm11 = vmmov %vm3342_vm6 }
 0x3b8   : > { %v1045_v42 = vsel %vm3342_vm6, %v1987_v33, %v1997_v38  ;;  %v1049_v44 = vsel %vm3343_vm12, %v1997_v38, %v1987_v33  ;;  %v1044_v45 = vsel %vm3344_vm8, %v1986_v37, %v1996_v39  ;;  %v1048_v48 = vsel %vm3345_vm7, %v1996_v39, %v1986_v37  ;;  %1604 = vmatpush1.bf16.msk.msra.mxu1 %vm3341_vm15, %v1603_v30  ;;  %vm3347_vm13 = vmmov %vm3342_vm6 }
 0x3b9   : > { %v1606_v40 = vpack.c.bf16 %v1049_v44, %v1048_v48  ;;  %v1609_v49 = vpack.c.bf16 %v1045_v42, %v1044_v45  ;;  %v2010_v54 = vpop.permute.xlu0 %2009  ;;  %v2000_v28 = vpop.permute.xlu1 %1999  ;;  %vm3348_vm15 = vmmov %vm3342_vm6  ;;  %vm3349_vm12 = vcmp.lt.s32.totalorder %v2499_v15, 113 }
 0x3ba   : > { %v2002_v52 = vunpack.i.h.bf16 %v2000_v28  ;;  %v2001_v55 = vunpack.i.l.bf16 %v2000_v28  ;;  %vm3350_vm8 = vmmov %vm3349_vm12  ;;  %v2012_v25 = vunpack.i.h.bf16 %v2010_v54  ;;  %v2011_v47 = vunpack.i.l.bf16 %v2010_v54 }
 0x3bb   : > { %1607 = vmatprep.subr.msk.bf16.mxu1 %vm2730_vm10, %v1606_v40  ;;  %vm3351_vm7 = vmmov %vm3350_vm8 }
 0x3bc   : > { %v1043_v56 = vsel %vm3346_vm11, %v1992_v14, %v2002_v52  ;;  %v1047_v58 = vsel %vm3347_vm13, %v2002_v52, %v1992_v14  ;;  %v1042_v46 = vsel %vm3342_vm6, %v1991_v63, %v2001_v55  ;;  %v1046_v59 = vsel %vm3348_vm15, %v2001_v55, %v1991_v63  ;;  %1610 = vmatpush2.bf16.msk.msra.mxu1 %vm2756_vm5, %v1609_v49  ;;  %vm3352_vm11 = vmmov %vm3351_vm7 }
 0x3bd   : > { %v1612_v32 = vpack.c.bf16 %v1047_v58, %v1046_v59  ;;  %v1615_v16 = vpack.c.bf16 %v1043_v56, %v1042_v46  ;;  %v2025_v3 = vpop.permute.xlu0 %2024  ;;  %v2015_v7 = vpop.permute.xlu1 %2014  ;;  %vm3354_vm13 = vmmov %vm3351_vm7  ;;  %vm3357_vm15 = vcmp.lt.s32.totalorder %v2499_v15, 127  ;;  %v2077_v15 = vld [vmem:[#allocation7 + $0x18] ss:$12 sps:$4 sm:$0xff]  }
 0x3be   : > { %v2017_v5 = vunpack.i.h.bf16 %v2015_v7  ;;  %v2016_v0 = vunpack.i.l.bf16 %v2015_v7  ;;  %vm3355_vm6 = vmmov %vm3351_vm7  ;;  %v2027_v27 = vunpack.i.h.bf16 %v2025_v3  ;;  %v2026_v29 = vunpack.i.l.bf16 %v2025_v3 }
 0x3bf   : > { %1613 = vmatprep.subr.msk.bf16.mxu1 %vm2730_vm10, %v1612_v32  ;;  %vm3353_vm10 = vmmov %vm3351_vm7 }
 0x3c0   : > { %v1009_v1 = vsel %vm3349_vm12, %v2007_v11, %v2017_v5  ;;  %v1013_v8 = vsel %vm3350_vm8, %v2017_v5, %v2007_v11  ;;  %v1008_v9 = vsel %vm3351_vm7, %v2006_v13, %v2016_v0  ;;  %v1012_v18 = vsel %vm3352_vm11, %v2016_v0, %v2006_v13  ;;  %1616 = vmatpush2.bf16.msk.msra.mxu1 %vm2756_vm5, %v1615_v16  ;;  %vm3356_vm5 = vmmov %vm3355_vm6 }
 0x3c1   : > { %v1618_v19 = vpack.c.bf16 %v1013_v8, %v1012_v18  ;;  %v1621_v60 = vpack.c.bf16 %v1009_v1, %v1008_v9  ;;  %v2020_v61 = vpop.permute.xlu1 %2019  ;;  %v2030_v6 = vpop.permute.xlu0 %2029  ;;  %vm3358_vm12 = vmmov %vm3357_vm15 }
 0x3c2   : > { %v2022_v17 = vunpack.i.h.bf16 %v2020_v61  ;;  %v2021_v50 = vunpack.i.l.bf16 %v2020_v61  ;;  %vm3359_vm8 = vmmov %vm3358_vm12  ;;  %v2032_v45 = vunpack.i.h.bf16 %v2030_v6  ;;  %v2031_v48 = vunpack.i.l.bf16 %v2030_v6 }
 0x3c3   : > { %1619 = vmatprep.subr.msk.bf16.mxu1 %vm2776_vm0, %v1618_v19  ;;  %vm3360_vm7 = vmmov %vm3359_vm8 }
 0x3c4   : > { %v1007_v20 = vsel %vm3353_vm10, %v2012_v25, %v2022_v17  ;;  %v1011_v21 = vsel %vm3354_vm13, %v2022_v17, %v2012_v25  ;;  %v1006_v23 = vsel %vm3355_vm6, %v2011_v47, %v2021_v50  ;;  %v1010_v41 = vsel %vm3356_vm5, %v2021_v50, %v2011_v47  ;;  %1622 = vmatpush2.bf16.msk.msra.mxu1 %vm2803_vm14, %v1621_v60  ;;  %v2071_v25 = vld [vmem:[#allocation7] ss:$12 sps:$4 sm:$0xff]   ;;  %v2074_v47 = vld [vmem:[#allocation7 + $0x8] ss:$12 sps:$4 sm:$0xff]  }
 0x3c5   : > { %v1624_v26 = vpack.c.bf16 %v1011_v21, %v1010_v41  ;;  %v1627_v51 = vpack.c.bf16 %v1007_v20, %v1006_v23  ;;  %v2035_v10 = vpop.permute.xlu1 %2034  ;;  %v2045_v39 = vpop.permute.xlu0 %2044  ;;  %v2075_v17 = vld [vmem:[#allocation7 + $0x1c] ss:$12 sps:$4 sm:$0xff]  }
 0x3c6   : > { %v2037_v30 = vunpack.i.h.bf16 %v2035_v10  ;;  %v2036_v35 = vunpack.i.l.bf16 %v2035_v10  ;;  %v2047_v56 = vunpack.i.h.bf16 %v2045_v39  ;;  %v2046_v58 = vunpack.i.l.bf16 %v2045_v39 }
 0x3c7   : > { %1625 = vmatprep.subr.msk.bf16.mxu1 %vm2776_vm0, %v1624_v26  ;;  %vm3361_vm0 = vmmov %vm3360_vm7 }
 0x3c8   : > { %v973_v36 = vsel %vm3357_vm15, %v2027_v27, %v2037_v30  ;;  %v977_v33 = vsel %vm3358_vm12, %v2037_v30, %v2027_v27  ;;  %v972_v37 = vsel %vm3359_vm8, %v2026_v29, %v2036_v35  ;;  %v976_v38 = vsel %vm3360_vm7, %v2036_v35, %v2026_v29  ;;  %1628 = vmatpush2.bf16.msk.msra.mxu1 %vm2803_vm14, %v1627_v51  ;;  %vm3362_vm11 = vmmov %vm3361_vm0 }
 0x3c9   : > { %v1630_v42 = vpack.c.bf16 %v977_v33, %v976_v38  ;;  %v1633_v44 = vpack.c.bf16 %v973_v36, %v972_v37  ;;  %v2040_v43 = vpop.permute.xlu1 %2039  ;;  %vm3363_vm10 = vmmov %vm3361_vm0  ;;  %v2050_v32 = vpop.permute.xlu0 %2049 }
 0x3ca   : > { %v2042_v40 = vunpack.i.h.bf16 %v2040_v43  ;;  %v2041_v49 = vunpack.i.l.bf16 %v2040_v43  ;;  %vm3364_vm14 = vmmov %vm3361_vm0  ;;  %v2052_v22 = vunpack.i.h.bf16 %v2050_v32  ;;  %v2051_v1 = vunpack.i.l.bf16 %v2050_v32 }
 0x3cb   : > { %1631 = vmatprep.subr.msk.bf16.mxu1 %vm2822_vm1, %v1630_v42 }
 0x3cc   : > { %v971_v54 = vsel %vm3361_vm0, %v2032_v45, %v2042_v40  ;;  %v975_v28 = vsel %vm3362_vm11, %v2042_v40, %v2032_v45  ;;  %v970_v62 = vsel %vm3363_vm10, %v2031_v48, %v2041_v49  ;;  %v974_v14 = vsel %vm3364_vm14, %v2041_v49, %v2031_v48  ;;  %1634 = vmatpush2.bf16.msk.msra.mxu1 %vm2837_vm2, %v1633_v44 }
 0x3cd   : > { %v1636_v63 = vpack.c.bf16 %v975_v28, %v974_v14  ;;  %v1639_v52 = vpack.c.bf16 %v971_v54, %v970_v62  ;;  %v2055_v55 = vpop.permute.xlu1 %2054 }
 0x3ce   : > { %v2057_v46 = vunpack.i.h.bf16 %v2055_v55  ;;  %v2056_v59 = vunpack.i.l.bf16 %v2055_v55 }
 0x3cf   : > { %1637 = vmatprep.subr.msk.bf16.mxu1 %vm2822_vm1, %v1636_v63  ;;  %vm3365_vm1 = vcmask 261120  }
 0x3d0   : > { %v1081_v16 = vsel %vm555_vm3, %v2047_v56, %v2057_v46  ;;  %v1085_v3 = vsel %vm555_vm3, %v2057_v46, %v2047_v56  ;;  %v1080_v7 = vsel %vm555_vm3, %v2046_v58, %v2056_v59  ;;  %v1084_v11 = vsel %vm555_vm3, %v2056_v59, %v2046_v58  ;;  %1640 = vmatpush2.bf16.msk.msra.mxu1 %vm2837_vm2, %v1639_v52  ;;  %vm3366_vm2 = vmmov %vm3365_vm1 }
 0x3d1   : > { %v1642_v13 = vpack.c.bf16 %v1085_v3, %v1084_v11  ;;  %v1645_v5 = vpack.c.bf16 %v1081_v16, %v1080_v7  ;;  %v2060_v0 = vpop.permute.xlu1 %2059  ;;  %1170 = vmatprep.subr.bf16.mxu1 %v2908_v34 }
 0x3d2   : > { %v2062_v8 = vunpack.i.h.bf16 %v2060_v0  ;;  %v2061_v9 = vunpack.i.l.bf16 %v2060_v0 }
 0x3d3   : > { %1643 = vmatprep.subr.msk.bf16.mxu0 %vm2858_vm4, %v1642_v13 }
 0x3d4   : > { %v1079_v18 = vsel %vm555_vm3, %v2052_v22, %v2062_v8  ;;  %v1083_v19 = vsel %vm555_vm3, %v2062_v8, %v2052_v22  ;;  %v1078_v31 = vsel %vm555_vm3, %v2051_v1, %v2061_v9  ;;  %v1082_v60 = vsel %vm555_vm3, %v2061_v9, %v2051_v1  ;;  %1171 = vmatpush2.bf16.msra.mxu1 %v2910_v2  ;;  %v2078_v2 = vld [vmem:[#allocation7 + $0x20] ss:$12 sps:$4 sm:$0xff]  }
 0x3d5   : > { %v1648_v34 = vpack.c.bf16 %v1083_v19, %v1082_v60  ;;  %v1651_v61 = vpack.c.bf16 %v1079_v18, %v1078_v31  ;;  %1646 = vmatpush1.bf16.msk.msra.mxu0 %vm2868_vm9, %v1645_v5  ;;  %1172 = vmatprep.subr.bf16.mxu1 %v2912_v4 }
 0x3d7   : > { %1649 = vmatprep.subr.msk.bf16.mxu0 %vm2858_vm4, %v1648_v34 }
 0x3d8   : > { %1173 = vmatpush2.bf16.msra.mxu1 %v2916_v24 }
 0x3d9   : > { %1652 = vmatpush1.bf16.msk.msra.mxu0 %vm2868_vm9, %v1651_v61 }
 0x3db   : > { %1175 = vmatmul.mubr.bf16.vlgmr.msra.gmra.mxu1 %v2071_v25 }
 0x3dc   : > { %1653 = vmatmul.mubr.msk.bf16.vlgmr.msra.gmra.mxu0 %vm3365_vm1, %v2074_v47  ;;  %1184 = vmatprep.mubr.bf16.mxu1 %v2075_v17 }
 0x3dd   : > { %1237 = vmatprep.mubr.bf16.mxu0 %v2268_v12 }
 0x3e3   : > { %1185 = vmatmul.mubr.bf16.gmra.mxu1 %v2077_v15 }
 0x3e4   : > { %1654 = vmatmul.mubr.msk.bf16.gmra.mxu0 %vm3366_vm2, %v2078_v2 }
 0x49b   : > { %v1176_v53 = vpop.f32.mrf.mxu1 }
 0x49c   : > { %v1229_v4 = vpop.f32.mrf.mxu0 }
 0x49d   : > { %v1178_v50 = vpop.f32.mrf.mxu1  ;;  %v1230_v6 = vadd.f32 %v1229_v4, %v1176_v53 }
 0x49e   : > { %v1231_v24 = vpop.f32.mrf.mxu0 }
 0x49f   : > { %v1232_v20 = vadd.f32 %v1231_v24, %v1178_v50  ;;  %v1180_v21 = vpop.f32.mrf.mxu1 }
 0x4a0   : > { %v1233_v57 = vpop.f32.mrf.mxu0 }
 0x4a1   : > { %v1182_v23 = vpop.f32.mrf.mxu1  ;;  %v1248_v41 = vadd.f32 %v1232_v20, %v1230_v6  ;;  %v1234_v51 = vadd.f32 %v1233_v57, %v1180_v21  ;;  %v2095_v57 = vld [vmem:[%s2424_s6] sm:$0xff] }
 0x4a2   : > { %v1235_v26 = vpop.f32.mrf.mxu0 }
 0x4a3   : > { %v1236_v10 = vadd.f32 %v1235_v26, %v1182_v23  ;;  %1249 = vadd.xlane.f32.xlu0 %v1248_v41  ;;  %v1186_v12 = vpop.f32.mrf.mxu1  ;;  %v2096_v41 = vld [vmem:[%s2424_s6 + $0x8] sm:$0xff] }
 0x4a4   : > { %v1239_v27 = vpop.f32.mrf.mxu0 }
 0x4a5   : > { %v1188_v29 = vpop.f32.mrf.mxu1  ;;  %v1251_v30 = vadd.f32 %v1236_v10, %v1234_v51  ;;  %v1240_v36 = vadd.f32 %v1239_v27, %v1186_v12  ;;  %v2097_v27 = vld [vmem:[%s2424_s6 + $0x10] sm:$0xff] }
 0x4a6   : > { %v1241_v35 = vpop.f32.mrf.mxu0 }
 0x4a7   : > { %v1242_v33 = vadd.f32 %v1241_v35, %v1188_v29  ;;  %1252 = vadd.xlane.f32.xlu1 %v1251_v30  ;;  %v1190_v37 = vpop.f32.mrf.mxu1  ;;  %v2098_v30 = vld [vmem:[%s2424_s6 + $0x18] sm:$0xff] }
 0x4a8   : > { %v1243_v38 = vpop.f32.mrf.mxu0 }
 0x4a9   : > { %v1192_v39 = vpop.f32.mrf.mxu1  ;;  %v1254_v42 = vadd.f32 %v1242_v33, %v1240_v36  ;;  %v1244_v43 = vadd.f32 %v1243_v38, %v1190_v37  ;;  %v2099_v38 = vld [vmem:[%s2424_s6 + $0x20] sm:$0xff] }
 0x4aa   : > { %v1245_v44 = vpop.f32.mrf.mxu0 }
 0x4ab   : > { %v1246_v45 = vadd.f32 %v1245_v44, %v1192_v39  ;;  %1255 = vadd.xlane.f32.xlu0 %v1254_v42  ;;  %v2100_v42 = vld [vmem:[%s2424_s6 + $0x28] sm:$0xff] }
 0x4ad   : > { %v1257_v48 = vadd.f32 %v1246_v45, %v1244_v43 }
 0x4af   : > { %1258 = vadd.xlane.f32.xlu0 %v1257_v48 }
 0x52c   : > { %v1250_v40 = vpop.xlane.xlu0 %1249 }
 0x52d   : > { %v1260_v49 = vmul.f32 0.00390625, %v1250_v40  ;;  %v2101_v40 = vld [vmem:[%s2424_s6 + $0x30] sm:$0xff] }
 0x52f   : > { %v1264_v54 = vsub.f32 %v1230_v6, %v1260_v49  ;;  %v1265_v28 = vsub.f32 %v1232_v20, %v1260_v49 }
 0x530   : > { %v1253_v62 = vpop.xlane.xlu1 %1252 }
 0x531   : > { %v1261_v14 = vmul.f32 0.00390625, %v1253_v62  ;;  %v1272_v63 = vmul.f32 %v1264_v54, %v1264_v54  ;;  %v1273_v52 = vmul.f32 %v1265_v28, %v1265_v28 }
 0x533   : > { %v1266_v55 = vsub.f32 %v1234_v51, %v1261_v14  ;;  %v1267_v56 = vsub.f32 %v1236_v10, %v1261_v14  ;;  %v1280_v58 = vadd.f32 %v1273_v52, %v1272_v63 }
 0x534   : > { %v1256_v46 = vpop.xlane.xlu0 %1255 }
 0x535   : > { %v1262_v59 = vmul.f32 0.00390625, %v1256_v46  ;;  %1281 = vadd.xlane.f32.xlu1 %v1280_v58  ;;  %v1274_v32 = vmul.f32 %v1266_v55, %v1266_v55  ;;  %v1275_v16 = vmul.f32 %v1267_v56, %v1267_v56 }
 0x537   : > { %v1268_v3 = vsub.f32 %v1240_v36, %v1262_v59  ;;  %v1269_v7 = vsub.f32 %v1242_v33, %v1262_v59  ;;  %v1283_v11 = vadd.f32 %v1275_v16, %v1274_v32 }
 0x538   : > { %v1259_v13 = vpop.xlane.xlu0 %1258 }
 0x539   : > { %v1263_v5 = vmul.f32 0.00390625, %v1259_v13  ;;  %1284 = vadd.xlane.f32.xlu0 %v1283_v11  ;;  %v1276_v0 = vmul.f32 %v1268_v3, %v1268_v3  ;;  %v1277_v22 = vmul.f32 %v1269_v7, %v1269_v7 }
 0x53b   : > { %v1270_v1 = vsub.f32 %v1244_v43, %v1263_v5  ;;  %v1271_v8 = vsub.f32 %v1246_v45, %v1263_v5  ;;  %v1286_v9 = vadd.f32 %v1277_v22, %v1276_v0 }
 0x53d   : > { %1287 = vadd.xlane.f32.xlu1 %v1286_v9  ;;  %v1278_v18 = vmul.f32 %v1270_v1, %v1270_v1  ;;  %v1279_v19 = vmul.f32 %v1271_v8, %v1271_v8 }
 0x53f   : > { %v1289_v31 = vadd.f32 %v1279_v19, %v1278_v18 }
 0x541   : > { %1290 = vadd.xlane.f32.xlu0 %v1289_v31 }
 0x5be   : > { %v1282_v60 = vpop.xlane.xlu1 %1281 }
 0x5bf   : > { %v1292_v34 = vmul.f32 0.00390625, %v1282_v60 }
 0x5c1   : > { %v1296_v61 = vadd.f32 1e-05, %v1292_v34 }
 0x5c2   : > { %v1285_v25 = vpop.xlane.xlu0 %1284 }
 0x5c3   : > { %2087 = vrsqrt.f32 %v1296_v61  ;;  %v1293_v47 = vmul.f32 0.00390625, %v1285_v25 }
 0x5c5   : > { %v1297_v17 = vadd.f32 1e-05, %v1293_v47 }
 0x5c6   : > { %v1288_v15 = vpop.xlane.xlu1 %1287 }
 0x5c7   : > { %2089 = vrsqrt.f32 %v1297_v17  ;;  %v1294_v2 = vmul.f32 0.00390625, %v1288_v15 }
 0x5c9   : > { %v1298_v53 = vadd.f32 1e-05, %v1294_v2 }
 0x5ca   : > { %v1291_v4 = vpop.xlane.xlu0 %1290 }
 0x5cb   : > { %2091 = vrsqrt.f32 %v1298_v53  ;;  %v1295_v50 = vmul.f32 0.00390625, %v1291_v4 }
 0x5cd   : > { %v1299_v24 = vadd.f32 1e-05, %v1295_v50 }
 0x5cf   : > { %2093 = vrsqrt.f32 %v1299_v24 }
 0x5d0   : > { %v2088_v6 = vpop.eup %2087 }
 0x5d1   : > { %v1304_v20 = vmul.f32 %v2088_v6, %v1264_v54  ;;  %v1305_v21 = vmul.f32 %v2088_v6, %v1265_v28  ;;  %v2102_v54 = vld [vmem:[%s2424_s6 + $0x38] sm:$0xff] }
 0x5d3   : > { %v1312_v23 = vadd.f32 %v2095_v57, %v1304_v20  ;;  %v1313_v26 = vadd.f32 %v2096_v41, %v1305_v21 }
 0x5d4   : > { %v2090_v51 = vpop.eup %2089 }
 0x5d5   : > { %1320 = vst [vmem:[%s3147_s17] sm:$0xff] %v1312_v23  ;;  %1321 = vst [vmem:[%s3147_s17 + $0x8] sm:$0xff] %v1313_v26  ;;  %v1306_v10 = vmul.f32 %v2090_v51, %v1266_v55  ;;  %v1307_v12 = vmul.f32 %v2090_v51, %v1267_v56 }
 0x5d7   : > { %v1314_v29 = vadd.f32 %v2097_v27, %v1306_v10  ;;  %v1315_v35 = vadd.f32 %v2098_v30, %v1307_v12 }
 0x5d8   : > { %v2092_v36 = vpop.eup %2091 }
 0x5d9   : > { %1322 = vst [vmem:[%s3147_s17 + $0x10] sm:$0xff] %v1314_v29  ;;  %1323 = vst [vmem:[%s3147_s17 + $0x18] sm:$0xff] %v1315_v35  ;;  %v1308_v33 = vmul.f32 %v2092_v36, %v1268_v3  ;;  %v1309_v37 = vmul.f32 %v2092_v36, %v1269_v7 }
 0x5db   : > { %v1316_v39 = vadd.f32 %v2099_v38, %v1308_v33  ;;  %v1317_v44 = vadd.f32 %v2100_v42, %v1309_v37 }
 0x5dc   : > { %v2094_v43 = vpop.eup %2093 }
 0x5dd   : > { %1324 = vst [vmem:[%s3147_s17 + $0x20] sm:$0xff] %v1316_v39  ;;  %1325 = vst [vmem:[%s3147_s17 + $0x28] sm:$0xff] %v1317_v44  ;;  %v1310_v45 = vmul.f32 %v2094_v43, %v1270_v1  ;;  %v1311_v48 = vmul.f32 %v2094_v43, %v1271_v8 }
 0x5df   : > { %v1318_v49 = vadd.f32 %v2101_v40, %v1310_v45  ;;  %v1319_v28 = vadd.f32 %v2102_v54, %v1311_v48 }
 0x5e1   : > { %1326 = vst [vmem:[%s3147_s17 + $0x30] sm:$0xff] %v1318_v49  ;;  %1327 = vst [vmem:[%s3147_s17 + $0x38] sm:$0xff] %v1319_v28 }
 0x5e2   : > { %2196 = shalt.err (!%p2193_p9)
}
 0x5e3   : > { %s2197_s6 = scalar_lea.hbm %s3164_s26, 1024  ;;  %s2201_s29 = scalar_lea.hbm %s3217_s3, 2048 }
 0x5e4   : > { %p2198_p13 = scmp.ne.s32.totalorder %s3164_s26, %s2197_s6  ;;  %p2202_p4 = scmp.lt.s32.totalorder %s3164_s26, %s3217_s3 }
 0x5e5   : > { %p2203_p8 = scmp.lt.s32.totalorder %s2201_s29, %s2197_s6 }
 0x5e6   : > { %p2199_p5 = pnand %p2198_p13, %p3367_p10 }
 0x5e7   : > { %p2204_p3 = por %p2203_p8, %p2202_p4 }
 0x5e8   : > { %p2200_p0 = pneg %p2199_p5 }
 0x5ea   : > { %p2205_p11 = pnand %p2204_p3, %p2200_p0 }
 0x5ec   : > { %2208 = shalt.err (!%p2205_p11)
}
 0x5ed   : > { %s2270_s17 = smov 256  }
 0x5ee   : > { %1672 = dma.vmem_to_hbm [thread:$0]  (%p3367_p10), %s3168_s22, 1024, %s3164_s26, %s1329_s16, %s2270_s17, %s2270_s17, %s2262_s25  }
 0x5ef PF: > { %s1357_s21 = sand.u32 1, %s2239_s12   ;;  %p3368_p1 = scmp.ne.s32.totalorder %s3240_s19, 0 }
 0x5f0   : > { %p3369_p2 = scmp.ge.s32.totalorder %s2251_s15, 2  ;;  %s1358_s23 = scalar_lea.sflag [#allocation4], %s1357_s21 }
 0x5f2   : > { %p1686_p6 = pnand %p3369_p2, %p3368_p1 }
 0x5f4   : > { %p1687_p12 = pneg %p1686_p6 }
 0x5f6   : > { %2234 = dma.done.wait (%p1687_p12), %s1358_s23, 1024  }
 0x5f7   : > { %2236 = vsyncadd (%p1687_p12), %s1358_s23, 4294966272  ;;  %p17_p7 = scmp.ge.s32.totalorder %s2363_s7, 4   ;;  %s3370_s12 = smov %s2243_s13 }
 0x5f8   : > { %s3371_s13 = smov %s2247_s14  ;;  %s3372_s14 = smov %s2379_s11 }
 0x5f9   : > { %s3373_s15 = smov %s2363_s7  ;;  %19 = sbr.rel (!%p17_p7) target bundleno = 6 (0x6), region = 85 }
 0x5fe   :  { %1363 = vsyncpa [#allocation3], 1 }
 0x5ff   :  { %1365 = vsyncpa [#allocation3 + $0x1], 1 }
 0x600   :  { %1366 = vsyncpa [#allocation6], 1 }
 0x601   :  { %1367 = vsyncpa [#allocation4], 1 }
 0x602   :  { %1369 = vsyncpa [#allocation4 + $0x1], 1 }

</bundles_post_ra>
